<compile_context>
chip_gen: v7x
topology: tpu7x:2x2x1
jax: 0.10.0
libtpu: 0.0.40
codegen_flags: <defaults>
</compile_context>

<pallas_src>
import math

import jax
import jax.numpy as jnp
from jax.experimental import pallas as pl
from jax.experimental.pallas import tpu as pltpu


def fl_kernel(adj_ref, embf_ref, embi_ref, vrow_ref, w1_ref, w2_ref, b_ref,
              out_ref):
    # adj_ref : (tf, N)       int32   neighbor node ids for this feature tile
    # embf_ref: (tf, E)       f32     embedding_f tile
    # embi_ref: (n_node, E)   f32     full node embedding table (VMEM resident)
    # vrow_ref: (1, n_node)   f32     per-node attention score (embedding_i @ u).T
    # w1_ref  : (E, E)        f32     W.weight[:, :E].T
    # w2_ref  : (E, E)        f32     W.weight[:, E:].T
    # b_ref   : (1, E)        f32     W.bias
    # out_ref : (tf, E)       f32
    tf_rows, n_neigh = adj_ref.shape
    n_node, _ = embi_ref.shape

    adj = adj_ref[...]                                     # (tf, N)
    emb_i = embi_ref[...]                                  # (n_node, E)
    v = vrow_ref[...]                                      # (1, n_node)
    node_ids = jax.lax.broadcasted_iota(jnp.int32, (1, n_node), 1)

    # --- agg_feature: attention over neighbors (gather fused in-kernel) ------
    # pass 1: per-neighbor attention logits + running max.  The softmax axis is
    # the unrolled static neighbor loop, so no cross-sublane reductions.
    scores = []
    for n in range(n_neigh):
        idx = adj[:, n:n + 1]                              # (tf, 1)
        onehot = (idx == node_ids).astype(jnp.float32)     # (tf, n_node)
        sc = jnp.sum(onehot * v, axis=-1, keepdims=True)   # = v[idx]  (tf, 1)
        sc = sc + jnp.where(idx != 0, 0.0, -10000.0)       # mask "no edge" (id 0)
        scores.append(sc)
    m = scores[0]
    for sc in scores[1:]:
        m = jnp.maximum(m, sc)

    # pass 2: exp-weights, denominator and a (tf, n_node) scatter matrix S, so
    # the weighted neighbor sum becomes a single MXU matmul  S @ embedding_i.
    denom = jnp.zeros((tf_rows, 1), jnp.float32)
    smat = jnp.zeros((tf_rows, n_node), jnp.float32)
    for n in range(n_neigh):
        idx = adj[:, n:n + 1]
        onehot = (idx == node_ids).astype(jnp.float32)
        w = jnp.exp(scores[n] - m)                         # (tf, 1)
        denom = denom + w
        smat = smat + w * onehot
    r = pl.reciprocal(denom, approx=True)                  # EUP slot
    r = r * (2.0 - denom * r)                              # one Newton step -> ~f32 accurate
    agg = jnp.dot(smat, emb_i, preferred_element_type=jnp.float32) * r   # (tf, E)
    # TODO(synk): dropout70 / dropout50 are stochastic; treated as identity (eval).

    # --- upd_feature: gated linear update ------------------------------------
    emb1 = embf_ref[...]
    logits = (jnp.dot(emb1, w1_ref[...], preferred_element_type=jnp.float32)
              + jnp.dot(agg, w2_ref[...], preferred_element_type=jnp.float32)
              + b_ref[...])
    gate = jax.nn.sigmoid(logits)
    out_ref[...] = (gate * emb1 + (1.0 - gate) * agg).astype(out_ref.dtype)


def _pick_tile_f(num_f, max_tile=512):
    """Largest divisor of num_f <= max_tile, preferring multiples of 8 and a
    grid of >= 2 steps (keeps both TensorCores busy on v7x)."""
    divs = [t for t in range(1, min(num_f, max_tile) + 1) if num_f % t == 0]
    pref = [t for t in divs if num_f // t >= 2 and t % 8 == 0]
    if pref:
        return max(pref)
    multi = [t for t in divs if num_f // t >= 2]
    if multi:
        return max(multi)
    return max(divs)


def fl_forward(adjacency_fi, embedding_i, params, *, tile_f=None):
    """Pallas implementation of FL.forward (dropout = identity / eval)."""
    emb_f = params["embedding_f"].astype(jnp.float32)       # (num_f, E)
    u = params["u"].astype(jnp.float32)                     # (E, 1)
    W = params["W_weight"].astype(jnp.float32)              # (E, 2E) torch Linear layout
    b = params["W_bias"].astype(jnp.float32)                # (E,)

    num_f, n_neigh = adjacency_fi.shape
    n_node, E = embedding_i.shape
    if tile_f is None:
        tile_f = _pick_tile_f(num_f)
    assert num_f % tile_f == 0

    emb_i = embedding_i.astype(jnp.float32)
    # Loop-invariant per-node attention score (n_node values): hoisted out of
    # the grid so the kernel never needs `u` itself.
    v_row = (emb_i @ u).reshape(1, n_node)
    w1t = W[:, :E].T                                         # (E, E)
    w2t = W[:, E:].T                                         # (E, E)
    b_row = b.reshape(1, E)

    # TODO(synk): for very large n_node the one-hot gather should be replaced
    # by a DMA row gather (embedding_i in pl.ANY + pltpu.make_async_copy).
    grid = (num_f // tile_f,)
    return pl.pallas_call(
        fl_kernel,
        out_shape=jax.ShapeDtypeStruct((num_f, E), jnp.float32),
        grid_spec=pltpu.PrefetchScalarGridSpec(
            num_scalar_prefetch=0,
            grid=grid,
            in_specs=[
                pl.BlockSpec((tile_f, n_neigh), lambda i: (i, 0)),   # adjacency tile
                pl.BlockSpec((tile_f, E), lambda i: (i, 0)),         # embedding_f tile
                pl.BlockSpec((n_node, E), lambda i: (0, 0)),         # embedding_i (resident)
                pl.BlockSpec((1, n_node), lambda i: (0, 0)),         # per-node scores
                pl.BlockSpec((E, E), lambda i: (0, 0)),              # W1^T
                pl.BlockSpec((E, E), lambda i: (0, 0)),              # W2^T
                pl.BlockSpec((1, E), lambda i: (0, 0)),              # bias
            ],
            out_specs=pl.BlockSpec((tile_f, E), lambda i: (i, 0)),
        ),
        compiler_params=pltpu.CompilerParams(
            dimension_semantics=("parallel",)),
    )(adjacency_fi.astype(jnp.int32), emb_f, emb_i, v_row, w1t, w2t, b_row)


def fl_reference(adjacency_fi, embedding_i, params):
    """Pure-JAX reference of the PyTorch forward (eval-mode dropout)."""
    emb_f = params["embedding_f"]
    u = params["u"]
    W = params["W_weight"]
    b = params["W_bias"]

    neigh = jnp.take(embedding_i, adjacency_fi, axis=0)      # (F, N, E)
    mask = jnp.where(adjacency_fi != 0, 0.0, -10000.0)
    alpha = jnp.squeeze(neigh @ u, -1) + mask                 # (F, N)
    alpha = jax.nn.softmax(alpha, axis=-1)[..., None]
    agg = jnp.sum(alpha * neigh, axis=1)                      # (F, E)
    gate = jax.nn.sigmoid(jnp.concatenate([emb_f, agg], 1) @ W.T + b)
    return gate * emb_f + (1.0 - gate) * agg


if __name__ == "__main__":
    # small, module-consistent shapes
    num_f = 64       # number of features (rows of embedding_f / adjacency_fi)
    n_node = 16      # rows of embedding_i
    emb_size = 32
    n_neigh = 8      # neighbors per feature (columns of adjacency_fi)

    key = jax.random.PRNGKey(0)
    k1, k2, k3, k4, k5, k6 = jax.random.split(key, 6)

    stdv = 1.0 / math.sqrt(emb_size)
    params = {
        "embedding_f": jax.random.uniform(
            k1, (num_f, emb_size), jnp.float32, -stdv, stdv),
        "u": jax.random.uniform(k2, (emb_size, 1), jnp.float32, -stdv, stdv),
        "W_weight": jax.random.uniform(
            k3, (emb_size, 2 * emb_size), jnp.float32, -stdv, stdv),
        "W_bias": jax.random.uniform(
            k4, (emb_size,), jnp.float32, -stdv, stdv),
    }

    # adjacency indices into embedding_i; zeros act as "no edge" (masked)
    adjacency_fi = jax.random.randint(
        k5, (num_f, n_neigh), 0, n_node, dtype=jnp.int32)
    embedding_i = jax.random.normal(k6, (n_node, emb_size), jnp.float32)

    out = fl_forward(adjacency_fi, embedding_i, params)
    out = jax.block_until_ready(out)

    ref = fl_reference(adjacency_fi, embedding_i, params)
    assert out.shape == (num_f, emb_size)
    assert jnp.allclose(out, ref, rtol=2e-4, atol=2e-5), "mismatch vs reference"

    print("KERNEL_OK")
</pallas_src>

<mosaic_0001>
module attributes {stable_mosaic.version = 11 : i64} {
  func.func @fl_kernel(%arg0: i32, %arg1: memref<32x8xi32, #tpu.memory_space<vmem>>, %arg2: memref<32x32xf32, #tpu.memory_space<vmem>>, %arg3: memref<16x32xf32, #tpu.memory_space<vmem>>, %arg4: memref<1x16xf32, #tpu.memory_space<vmem>>, %arg5: memref<32x32xf32, #tpu.memory_space<vmem>>, %arg6: memref<32x32xf32, #tpu.memory_space<vmem>>, %arg7: memref<1x32xf32, #tpu.memory_space<vmem>>, %arg8: memref<32x32xf32, #tpu.memory_space<vmem>>) attributes {dimension_semantics = [#tpu.dimension_semantics<parallel>], iteration_bounds = array<i64: 2>, scalar_prefetch = 0 : i64, scratch_operands = 0 : i64, tpu.core_type = #tpu.core_type<tc>, window_params = [{transform_indices = @transform_0, window_bounds = array<i64: 32, 8>}, {transform_indices = @transform_1, window_bounds = array<i64: 32, 32>}, {pipeline_mode = #tpu.pipeline_mode<synchronous>, transform_indices = @transform_2, window_bounds = array<i64: 16, 32>}, {pipeline_mode = #tpu.pipeline_mode<synchronous>, transform_indices = @transform_3, window_bounds = array<i64: 1, 16>}, {pipeline_mode = #tpu.pipeline_mode<synchronous>, transform_indices = @transform_4, window_bounds = array<i64: 32, 32>}, {pipeline_mode = #tpu.pipeline_mode<synchronous>, transform_indices = @transform_5, window_bounds = array<i64: 32, 32>}, {pipeline_mode = #tpu.pipeline_mode<synchronous>, transform_indices = @transform_6, window_bounds = array<i64: 1, 32>}, {transform_indices = @transform_7, window_bounds = array<i64: 32, 32>}]} {
    %c0 = arith.constant 0 : index
    %c0_0 = arith.constant 0 : index
    %0 = vector.load %arg1[%c0, %c0_0] : memref<32x8xi32, #tpu.memory_space<vmem>>, vector<32x8xi32>
    %c0_1 = arith.constant 0 : index
    %c0_2 = arith.constant 0 : index
    %1 = vector.load %arg3[%c0_1, %c0_2] : memref<16x32xf32, #tpu.memory_space<vmem>>, vector<16x32xf32>
    %c0_3 = arith.constant 0 : index
    %c0_4 = arith.constant 0 : index
    %2 = vector.load %arg4[%c0_3, %c0_4] : memref<1x16xf32, #tpu.memory_space<vmem>>, vector<1x16xf32>
    %3 = tpu.iota {dimensions = array<i32: 1>} : vector<1x16xi32>
    %4 = vector.extract_strided_slice %0 {offsets = [0, 0], sizes = [32, 1], strides = [1, 1]} : vector<32x8xi32> to vector<32x1xi32>
    %5 = vector.broadcast %4 : vector<32x1xi32> to vector<32x16xi32>
    %6 = vector.broadcast %3 : vector<1x16xi32> to vector<32x16xi32>
    %7 = arith.cmpi eq, %5, %6 : vector<32x16xi32>
    %8 = arith.extui %7 : vector<32x16xi1> to vector<32x16xi32>
    %9 = arith.sitofp %8 : vector<32x16xi32> to vector<32x16xf32>
    %10 = vector.broadcast %2 : vector<1x16xf32> to vector<32x16xf32>
    %11 = arith.mulf %9, %10 : vector<32x16xf32>
    %cst = arith.constant dense<0.000000e+00> : vector<32xf32>
    %12 = vector.multi_reduction <add>, %11, %cst [1] : vector<32x16xf32> to vector<32xf32>
    %13 = vector.shape_cast %12 : vector<32xf32> to vector<32x1xf32>
    %c0_i32 = arith.constant 0 : i32
    %14 = vector.broadcast %c0_i32 : i32 to vector<32x1xi32>
    %15 = arith.cmpi ne, %4, %14 : vector<32x1xi32>
    %cst_5 = arith.constant 0.000000e+00 : f32
    %cst_6 = arith.constant -1.000000e+04 : f32
    %16 = vector.broadcast %cst_5 : f32 to vector<32x1xf32>
    %17 = vector.broadcast %cst_6 : f32 to vector<32x1xf32>
    %18 = arith.select %15, %16, %17 : vector<32x1xi1>, vector<32x1xf32>
    %19 = arith.addf %13, %18 : vector<32x1xf32>
    %20 = vector.extract_strided_slice %0 {offsets = [0, 1], sizes = [32, 1], strides = [1, 1]} : vector<32x8xi32> to vector<32x1xi32>
    %21 = vector.broadcast %20 : vector<32x1xi32> to vector<32x16xi32>
    %22 = vector.broadcast %3 : vector<1x16xi32> to vector<32x16xi32>
    %23 = arith.cmpi eq, %21, %22 : vector<32x16xi32>
    %24 = arith.extui %23 : vector<32x16xi1> to vector<32x16xi32>
    %25 = arith.sitofp %24 : vector<32x16xi32> to vector<32x16xf32>
    %26 = vector.broadcast %2 : vector<1x16xf32> to vector<32x16xf32>
    %27 = arith.mulf %25, %26 : vector<32x16xf32>
    %cst_7 = arith.constant dense<0.000000e+00> : vector<32xf32>
    %28 = vector.multi_reduction <add>, %27, %cst_7 [1] : vector<32x16xf32> to vector<32xf32>
    %29 = vector.shape_cast %28 : vector<32xf32> to vector<32x1xf32>
    %c0_i32_8 = arith.constant 0 : i32
    %30 = vector.broadcast %c0_i32_8 : i32 to vector<32x1xi32>
    %31 = arith.cmpi ne, %20, %30 : vector<32x1xi32>
    %cst_9 = arith.constant 0.000000e+00 : f32
    %cst_10 = arith.constant -1.000000e+04 : f32
    %32 = vector.broadcast %cst_9 : f32 to vector<32x1xf32>
    %33 = vector.broadcast %cst_10 : f32 to vector<32x1xf32>
    %34 = arith.select %31, %32, %33 : vector<32x1xi1>, vector<32x1xf32>
    %35 = arith.addf %29, %34 : vector<32x1xf32>
    %36 = vector.extract_strided_slice %0 {offsets = [0, 2], sizes = [32, 1], strides = [1, 1]} : vector<32x8xi32> to vector<32x1xi32>
    %37 = vector.broadcast %36 : vector<32x1xi32> to vector<32x16xi32>
    %38 = vector.broadcast %3 : vector<1x16xi32> to vector<32x16xi32>
    %39 = arith.cmpi eq, %37, %38 : vector<32x16xi32>
    %40 = arith.extui %39 : vector<32x16xi1> to vector<32x16xi32>
    %41 = arith.sitofp %40 : vector<32x16xi32> to vector<32x16xf32>
    %42 = vector.broadcast %2 : vector<1x16xf32> to vector<32x16xf32>
    %43 = arith.mulf %41, %42 : vector<32x16xf32>
    %cst_11 = arith.constant dense<0.000000e+00> : vector<32xf32>
    %44 = vector.multi_reduction <add>, %43, %cst_11 [1] : vector<32x16xf32> to vector<32xf32>
    %45 = vector.shape_cast %44 : vector<32xf32> to vector<32x1xf32>
    %c0_i32_12 = arith.constant 0 : i32
    %46 = vector.broadcast %c0_i32_12 : i32 to vector<32x1xi32>
    %47 = arith.cmpi ne, %36, %46 : vector<32x1xi32>
    %cst_13 = arith.constant 0.000000e+00 : f32
    %cst_14 = arith.constant -1.000000e+04 : f32
    %48 = vector.broadcast %cst_13 : f32 to vector<32x1xf32>
    %49 = vector.broadcast %cst_14 : f32 to vector<32x1xf32>
    %50 = arith.select %47, %48, %49 : vector<32x1xi1>, vector<32x1xf32>
    %51 = arith.addf %45, %50 : vector<32x1xf32>
    %52 = vector.extract_strided_slice %0 {offsets = [0, 3], sizes = [32, 1], strides = [1, 1]} : vector<32x8xi32> to vector<32x1xi32>
    %53 = vector.broadcast %52 : vector<32x1xi32> to vector<32x16xi32>
    %54 = vector.broadcast %3 : vector<1x16xi32> to vector<32x16xi32>
    %55 = arith.cmpi eq, %53, %54 : vector<32x16xi32>
    %56 = arith.extui %55 : vector<32x16xi1> to vector<32x16xi32>
    %57 = arith.sitofp %56 : vector<32x16xi32> to vector<32x16xf32>
    %58 = vector.broadcast %2 : vector<1x16xf32> to vector<32x16xf32>
    %59 = arith.mulf %57, %58 : vector<32x16xf32>
    %cst_15 = arith.constant dense<0.000000e+00> : vector<32xf32>
    %60 = vector.multi_reduction <add>, %59, %cst_15 [1] : vector<32x16xf32> to vector<32xf32>
    %61 = vector.shape_cast %60 : vector<32xf32> to vector<32x1xf32>
    %c0_i32_16 = arith.constant 0 : i32
    %62 = vector.broadcast %c0_i32_16 : i32 to vector<32x1xi32>
    %63 = arith.cmpi ne, %52, %62 : vector<32x1xi32>
    %cst_17 = arith.constant 0.000000e+00 : f32
    %cst_18 = arith.constant -1.000000e+04 : f32
    %64 = vector.broadcast %cst_17 : f32 to vector<32x1xf32>
    %65 = vector.broadcast %cst_18 : f32 to vector<32x1xf32>
    %66 = arith.select %63, %64, %65 : vector<32x1xi1>, vector<32x1xf32>
    %67 = arith.addf %61, %66 : vector<32x1xf32>
    %68 = vector.extract_strided_slice %0 {offsets = [0, 4], sizes = [32, 1], strides = [1, 1]} : vector<32x8xi32> to vector<32x1xi32>
    %69 = vector.broadcast %68 : vector<32x1xi32> to vector<32x16xi32>
    %70 = vector.broadcast %3 : vector<1x16xi32> to vector<32x16xi32>
    %71 = arith.cmpi eq, %69, %70 : vector<32x16xi32>
    %72 = arith.extui %71 : vector<32x16xi1> to vector<32x16xi32>
    %73 = arith.sitofp %72 : vector<32x16xi32> to vector<32x16xf32>
    %74 = vector.broadcast %2 : vector<1x16xf32> to vector<32x16xf32>
    %75 = arith.mulf %73, %74 : vector<32x16xf32>
    %cst_19 = arith.constant dense<0.000000e+00> : vector<32xf32>
    %76 = vector.multi_reduction <add>, %75, %cst_19 [1] : vector<32x16xf32> to vector<32xf32>
    %77 = vector.shape_cast %76 : vector<32xf32> to vector<32x1xf32>
    %c0_i32_20 = arith.constant 0 : i32
    %78 = vector.broadcast %c0_i32_20 : i32 to vector<32x1xi32>
    %79 = arith.cmpi ne, %68, %78 : vector<32x1xi32>
    %cst_21 = arith.constant 0.000000e+00 : f32
    %cst_22 = arith.constant -1.000000e+04 : f32
    %80 = vector.broadcast %cst_21 : f32 to vector<32x1xf32>
    %81 = vector.broadcast %cst_22 : f32 to vector<32x1xf32>
    %82 = arith.select %79, %80, %81 : vector<32x1xi1>, vector<32x1xf32>
    %83 = arith.addf %77, %82 : vector<32x1xf32>
    %84 = vector.extract_strided_slice %0 {offsets = [0, 5], sizes = [32, 1], strides = [1, 1]} : vector<32x8xi32> to vector<32x1xi32>
    %85 = vector.broadcast %84 : vector<32x1xi32> to vector<32x16xi32>
    %86 = vector.broadcast %3 : vector<1x16xi32> to vector<32x16xi32>
    %87 = arith.cmpi eq, %85, %86 : vector<32x16xi32>
    %88 = arith.extui %87 : vector<32x16xi1> to vector<32x16xi32>
    %89 = arith.sitofp %88 : vector<32x16xi32> to vector<32x16xf32>
    %90 = vector.broadcast %2 : vector<1x16xf32> to vector<32x16xf32>
    %91 = arith.mulf %89, %90 : vector<32x16xf32>
    %cst_23 = arith.constant dense<0.000000e+00> : vector<32xf32>
    %92 = vector.multi_reduction <add>, %91, %cst_23 [1] : vector<32x16xf32> to vector<32xf32>
    %93 = vector.shape_cast %92 : vector<32xf32> to vector<32x1xf32>
    %c0_i32_24 = arith.constant 0 : i32
    %94 = vector.broadcast %c0_i32_24 : i32 to vector<32x1xi32>
    %95 = arith.cmpi ne, %84, %94 : vector<32x1xi32>
    %cst_25 = arith.constant 0.000000e+00 : f32
    %cst_26 = arith.constant -1.000000e+04 : f32
    %96 = vector.broadcast %cst_25 : f32 to vector<32x1xf32>
    %97 = vector.broadcast %cst_26 : f32 to vector<32x1xf32>
    %98 = arith.select %95, %96, %97 : vector<32x1xi1>, vector<32x1xf32>
    %99 = arith.addf %93, %98 : vector<32x1xf32>
    %100 = vector.extract_strided_slice %0 {offsets = [0, 6], sizes = [32, 1], strides = [1, 1]} : vector<32x8xi32> to vector<32x1xi32>
    %101 = vector.broadcast %100 : vector<32x1xi32> to vector<32x16xi32>
    %102 = vector.broadcast %3 : vector<1x16xi32> to vector<32x16xi32>
    %103 = arith.cmpi eq, %101, %102 : vector<32x16xi32>
    %104 = arith.extui %103 : vector<32x16xi1> to vector<32x16xi32>
    %105 = arith.sitofp %104 : vector<32x16xi32> to vector<32x16xf32>
    %106 = vector.broadcast %2 : vector<1x16xf32> to vector<32x16xf32>
    %107 = arith.mulf %105, %106 : vector<32x16xf32>
    %cst_27 = arith.constant dense<0.000000e+00> : vector<32xf32>
    %108 = vector.multi_reduction <add>, %107, %cst_27 [1] : vector<32x16xf32> to vector<32xf32>
    %109 = vector.shape_cast %108 : vector<32xf32> to vector<32x1xf32>
    %c0_i32_28 = arith.constant 0 : i32
    %110 = vector.broadcast %c0_i32_28 : i32 to vector<32x1xi32>
    %111 = arith.cmpi ne, %100, %110 : vector<32x1xi32>
    %cst_29 = arith.constant 0.000000e+00 : f32
    %cst_30 = arith.constant -1.000000e+04 : f32
    %112 = vector.broadcast %cst_29 : f32 to vector<32x1xf32>
    %113 = vector.broadcast %cst_30 : f32 to vector<32x1xf32>
    %114 = arith.select %111, %112, %113 : vector<32x1xi1>, vector<32x1xf32>
    %115 = arith.addf %109, %114 : vector<32x1xf32>
    %116 = vector.extract_strided_slice %0 {offsets = [0, 7], sizes = [32, 1], strides = [1, 1]} : vector<32x8xi32> to vector<32x1xi32>
    %117 = vector.broadcast %116 : vector<32x1xi32> to vector<32x16xi32>
    %118 = vector.broadcast %3 : vector<1x16xi32> to vector<32x16xi32>
    %119 = arith.cmpi eq, %117, %118 : vector<32x16xi32>
    %120 = arith.extui %119 : vector<32x16xi1> to vector<32x16xi32>
    %121 = arith.sitofp %120 : vector<32x16xi32> to vector<32x16xf32>
    %122 = vector.broadcast %2 : vector<1x16xf32> to vector<32x16xf32>
    %123 = arith.mulf %121, %122 : vector<32x16xf32>
    %cst_31 = arith.constant dense<0.000000e+00> : vector<32xf32>
    %124 = vector.multi_reduction <add>, %123, %cst_31 [1] : vector<32x16xf32> to vector<32xf32>
    %125 = vector.shape_cast %124 : vector<32xf32> to vector<32x1xf32>
    %c0_i32_32 = arith.constant 0 : i32
    %126 = vector.broadcast %c0_i32_32 : i32 to vector<32x1xi32>
    %127 = arith.cmpi ne, %116, %126 : vector<32x1xi32>
    %cst_33 = arith.constant 0.000000e+00 : f32
    %cst_34 = arith.constant -1.000000e+04 : f32
    %128 = vector.broadcast %cst_33 : f32 to vector<32x1xf32>
    %129 = vector.broadcast %cst_34 : f32 to vector<32x1xf32>
    %130 = arith.select %127, %128, %129 : vector<32x1xi1>, vector<32x1xf32>
    %131 = arith.addf %125, %130 : vector<32x1xf32>
    %132 = arith.maximumf %19, %35 : vector<32x1xf32>
    %133 = arith.maximumf %132, %51 : vector<32x1xf32>
    %134 = arith.maximumf %133, %67 : vector<32x1xf32>
    %135 = arith.maximumf %134, %83 : vector<32x1xf32>
    %136 = arith.maximumf %135, %99 : vector<32x1xf32>
    %137 = arith.maximumf %136, %115 : vector<32x1xf32>
    %138 = arith.maximumf %137, %131 : vector<32x1xf32>
    %cst_35 = arith.constant 0.000000e+00 : f32
    %139 = vector.broadcast %cst_35 : f32 to vector<32x1xf32>
    %cst_36 = arith.constant 0.000000e+00 : f32
    %140 = vector.broadcast %cst_36 : f32 to vector<32x16xf32>
    %141 = vector.extract_strided_slice %0 {offsets = [0, 0], sizes = [32, 1], strides = [1, 1]} : vector<32x8xi32> to vector<32x1xi32>
    %142 = vector.broadcast %141 : vector<32x1xi32> to vector<32x16xi32>
    %143 = vector.broadcast %3 : vector<1x16xi32> to vector<32x16xi32>
    %144 = arith.cmpi eq, %142, %143 : vector<32x16xi32>
    %145 = arith.extui %144 : vector<32x16xi1> to vector<32x16xi32>
    %146 = arith.sitofp %145 : vector<32x16xi32> to vector<32x16xf32>
    %147 = arith.subf %19, %138 : vector<32x1xf32>
    %148 = math.exp %147 : vector<32x1xf32>
    %149 = arith.addf %139, %148 : vector<32x1xf32>
    %150 = vector.broadcast %148 : vector<32x1xf32> to vector<32x16xf32>
    %151 = arith.mulf %150, %146 : vector<32x16xf32>
    %152 = arith.addf %140, %151 : vector<32x16xf32>
    %153 = vector.extract_strided_slice %0 {offsets = [0, 1], sizes = [32, 1], strides = [1, 1]} : vector<32x8xi32> to vector<32x1xi32>
    %154 = vector.broadcast %153 : vector<32x1xi32> to vector<32x16xi32>
    %155 = vector.broadcast %3 : vector<1x16xi32> to vector<32x16xi32>
    %156 = arith.cmpi eq, %154, %155 : vector<32x16xi32>
    %157 = arith.extui %156 : vector<32x16xi1> to vector<32x16xi32>
    %158 = arith.sitofp %157 : vector<32x16xi32> to vector<32x16xf32>
    %159 = arith.subf %35, %138 : vector<32x1xf32>
    %160 = math.exp %159 : vector<32x1xf32>
    %161 = arith.addf %149, %160 : vector<32x1xf32>
    %162 = vector.broadcast %160 : vector<32x1xf32> to vector<32x16xf32>
    %163 = arith.mulf %162, %158 : vector<32x16xf32>
    %164 = arith.addf %152, %163 : vector<32x16xf32>
    %165 = vector.extract_strided_slice %0 {offsets = [0, 2], sizes = [32, 1], strides = [1, 1]} : vector<32x8xi32> to vector<32x1xi32>
    %166 = vector.broadcast %165 : vector<32x1xi32> to vector<32x16xi32>
    %167 = vector.broadcast %3 : vector<1x16xi32> to vector<32x16xi32>
    %168 = arith.cmpi eq, %166, %167 : vector<32x16xi32>
    %169 = arith.extui %168 : vector<32x16xi1> to vector<32x16xi32>
    %170 = arith.sitofp %169 : vector<32x16xi32> to vector<32x16xf32>
    %171 = arith.subf %51, %138 : vector<32x1xf32>
    %172 = math.exp %171 : vector<32x1xf32>
    %173 = arith.addf %161, %172 : vector<32x1xf32>
    %174 = vector.broadcast %172 : vector<32x1xf32> to vector<32x16xf32>
    %175 = arith.mulf %174, %170 : vector<32x16xf32>
    %176 = arith.addf %164, %175 : vector<32x16xf32>
    %177 = vector.extract_strided_slice %0 {offsets = [0, 3], sizes = [32, 1], strides = [1, 1]} : vector<32x8xi32> to vector<32x1xi32>
    %178 = vector.broadcast %177 : vector<32x1xi32> to vector<32x16xi32>
    %179 = vector.broadcast %3 : vector<1x16xi32> to vector<32x16xi32>
    %180 = arith.cmpi eq, %178, %179 : vector<32x16xi32>
    %181 = arith.extui %180 : vector<32x16xi1> to vector<32x16xi32>
    %182 = arith.sitofp %181 : vector<32x16xi32> to vector<32x16xf32>
    %183 = arith.subf %67, %138 : vector<32x1xf32>
    %184 = math.exp %183 : vector<32x1xf32>
    %185 = arith.addf %173, %184 : vector<32x1xf32>
    %186 = vector.broadcast %184 : vector<32x1xf32> to vector<32x16xf32>
    %187 = arith.mulf %186, %182 : vector<32x16xf32>
    %188 = arith.addf %176, %187 : vector<32x16xf32>
    %189 = vector.extract_strided_slice %0 {offsets = [0, 4], sizes = [32, 1], strides = [1, 1]} : vector<32x8xi32> to vector<32x1xi32>
    %190 = vector.broadcast %189 : vector<32x1xi32> to vector<32x16xi32>
    %191 = vector.broadcast %3 : vector<1x16xi32> to vector<32x16xi32>
    %192 = arith.cmpi eq, %190, %191 : vector<32x16xi32>
    %193 = arith.extui %192 : vector<32x16xi1> to vector<32x16xi32>
    %194 = arith.sitofp %193 : vector<32x16xi32> to vector<32x16xf32>
    %195 = arith.subf %83, %138 : vector<32x1xf32>
    %196 = math.exp %195 : vector<32x1xf32>
    %197 = arith.addf %185, %196 : vector<32x1xf32>
    %198 = vector.broadcast %196 : vector<32x1xf32> to vector<32x16xf32>
    %199 = arith.mulf %198, %194 : vector<32x16xf32>
    %200 = arith.addf %188, %199 : vector<32x16xf32>
    %201 = vector.extract_strided_slice %0 {offsets = [0, 5], sizes = [32, 1], strides = [1, 1]} : vector<32x8xi32> to vector<32x1xi32>
    %202 = vector.broadcast %201 : vector<32x1xi32> to vector<32x16xi32>
    %203 = vector.broadcast %3 : vector<1x16xi32> to vector<32x16xi32>
    %204 = arith.cmpi eq, %202, %203 : vector<32x16xi32>
    %205 = arith.extui %204 : vector<32x16xi1> to vector<32x16xi32>
    %206 = arith.sitofp %205 : vector<32x16xi32> to vector<32x16xf32>
    %207 = arith.subf %99, %138 : vector<32x1xf32>
    %208 = math.exp %207 : vector<32x1xf32>
    %209 = arith.addf %197, %208 : vector<32x1xf32>
    %210 = vector.broadcast %208 : vector<32x1xf32> to vector<32x16xf32>
    %211 = arith.mulf %210, %206 : vector<32x16xf32>
    %212 = arith.addf %200, %211 : vector<32x16xf32>
    %213 = vector.extract_strided_slice %0 {offsets = [0, 6], sizes = [32, 1], strides = [1, 1]} : vector<32x8xi32> to vector<32x1xi32>
    %214 = vector.broadcast %213 : vector<32x1xi32> to vector<32x16xi32>
    %215 = vector.broadcast %3 : vector<1x16xi32> to vector<32x16xi32>
    %216 = arith.cmpi eq, %214, %215 : vector<32x16xi32>
    %217 = arith.extui %216 : vector<32x16xi1> to vector<32x16xi32>
    %218 = arith.sitofp %217 : vector<32x16xi32> to vector<32x16xf32>
    %219 = arith.subf %115, %138 : vector<32x1xf32>
    %220 = math.exp %219 : vector<32x1xf32>
    %221 = arith.addf %209, %220 : vector<32x1xf32>
    %222 = vector.broadcast %220 : vector<32x1xf32> to vector<32x16xf32>
    %223 = arith.mulf %222, %218 : vector<32x16xf32>
    %224 = arith.addf %212, %223 : vector<32x16xf32>
    %225 = vector.extract_strided_slice %0 {offsets = [0, 7], sizes = [32, 1], strides = [1, 1]} : vector<32x8xi32> to vector<32x1xi32>
    %226 = vector.broadcast %225 : vector<32x1xi32> to vector<32x16xi32>
    %227 = vector.broadcast %3 : vector<1x16xi32> to vector<32x16xi32>
    %228 = arith.cmpi eq, %226, %227 : vector<32x16xi32>
    %229 = arith.extui %228 : vector<32x16xi1> to vector<32x16xi32>
    %230 = arith.sitofp %229 : vector<32x16xi32> to vector<32x16xf32>
    %231 = arith.subf %131, %138 : vector<32x1xf32>
    %232 = math.exp %231 : vector<32x1xf32>
    %233 = arith.addf %221, %232 : vector<32x1xf32>
    %234 = vector.broadcast %232 : vector<32x1xf32> to vector<32x16xf32>
    %235 = arith.mulf %234, %230 : vector<32x16xf32>
    %236 = arith.addf %224, %235 : vector<32x16xf32>
    %237 = tpu.reciprocal %233 {approx = true} : vector<32x1xf32> -> vector<32x1xf32>
    %238 = arith.mulf %233, %237 : vector<32x1xf32>
    %cst_37 = arith.constant 2.000000e+00 : f32
    %239 = vector.broadcast %cst_37 : f32 to vector<32x1xf32>
    %240 = arith.subf %239, %238 : vector<32x1xf32>
    %241 = arith.mulf %237, %240 : vector<32x1xf32>
    %cst_38 = arith.constant dense<0.000000e+00> : vector<32x32xf32>
    %242 = tpu.matmul %236, %1, %cst_38 {dimension_numbers = #tpu.dot_dimension_numbers<[1], [0], [0], [1], [0, 0, 1, 1], [], []>} : vector<32x16xf32>, vector<16x32xf32>, vector<32x32xf32> -> vector<32x32xf32>
    %243 = vector.broadcast %241 : vector<32x1xf32> to vector<32x32xf32>
    %244 = arith.mulf %242, %243 : vector<32x32xf32>
    %c0_39 = arith.constant 0 : index
    %c0_40 = arith.constant 0 : index
    %245 = vector.load %arg2[%c0_39, %c0_40] : memref<32x32xf32, #tpu.memory_space<vmem>>, vector<32x32xf32>
    %c0_41 = arith.constant 0 : index
    %c0_42 = arith.constant 0 : index
    %246 = vector.load %arg5[%c0_41, %c0_42] : memref<32x32xf32, #tpu.memory_space<vmem>>, vector<32x32xf32>
    %cst_43 = arith.constant dense<0.000000e+00> : vector<32x32xf32>
    %247 = tpu.matmul %245, %246, %cst_43 {dimension_numbers = #tpu.dot_dimension_numbers<[1], [0], [0], [1], [0, 0, 1, 1], [], []>} : vector<32x32xf32>, vector<32x32xf32>, vector<32x32xf32> -> vector<32x32xf32>
    %c0_44 = arith.constant 0 : index
    %c0_45 = arith.constant 0 : index
    %248 = vector.load %arg6[%c0_44, %c0_45] : memref<32x32xf32, #tpu.memory_space<vmem>>, vector<32x32xf32>
    %cst_46 = arith.constant dense<0.000000e+00> : vector<32x32xf32>
    %249 = tpu.matmul %244, %248, %cst_46 {dimension_numbers = #tpu.dot_dimension_numbers<[1], [0], [0], [1], [0, 0, 1, 1], [], []>} : vector<32x32xf32>, vector<32x32xf32>, vector<32x32xf32> -> vector<32x32xf32>
    %250 = arith.addf %247, %249 : vector<32x32xf32>
    %c0_47 = arith.constant 0 : index
    %c0_48 = arith.constant 0 : index
    %251 = vector.load %arg7[%c0_47, %c0_48] : memref<1x32xf32, #tpu.memory_space<vmem>>, vector<1x32xf32>
    %252 = vector.broadcast %251 : vector<1x32xf32> to vector<32x32xf32>
    %253 = arith.addf %250, %252 : vector<32x32xf32>
    %254 = arith.negf %253 : vector<32x32xf32>
    %255 = math.exp %254 : vector<32x32xf32>
    %cst_49 = arith.constant 1.000000e+00 : f32
    %256 = vector.broadcast %cst_49 : f32 to vector<32x32xf32>
    %257 = arith.addf %256, %255 : vector<32x32xf32>
    %258 = arith.divf %256, %257 : vector<32x32xf32>
    %259 = arith.mulf %258, %245 : vector<32x32xf32>
    %cst_50 = arith.constant 1.000000e+00 : f32
    %260 = vector.broadcast %cst_50 : f32 to vector<32x32xf32>
    %261 = arith.subf %260, %258 : vector<32x32xf32>
    %262 = arith.mulf %261, %244 : vector<32x32xf32>
    %263 = arith.addf %259, %262 : vector<32x32xf32>
    %c0_51 = arith.constant 0 : index
    %c0_52 = arith.constant 0 : index
    %264 = vector.load %arg8[%c0_51, %c0_52] : memref<32x32xf32, #tpu.memory_space<vmem>>, vector<32x32xf32>
    tpu.vector_store %arg8[%c0_51, %c0_52], %263 {strides = array<i32>} : memref<32x32xf32, #tpu.memory_space<vmem>>, vector<32x32xf32>,
    return
  }
  func.func @transform_0(%arg0: i32) -> (i32, i32) {
    %c0_i32 = arith.constant 0 : i32
    %c0_i32_0 = arith.constant 0 : i32
    return %arg0, %c0_i32 : i32, i32
  }
  func.func @transform_1(%arg0: i32) -> (i32, i32) {
    %c0_i32 = arith.constant 0 : i32
    %c0_i32_0 = arith.constant 0 : i32
    return %arg0, %c0_i32 : i32, i32
  }
  func.func @transform_2(%arg0: i32) -> (i32, i32) {
    %c0_i32 = arith.constant 0 : i32
    %c0_i32_0 = arith.constant 0 : i32
    %c0_i32_1 = arith.constant 0 : i32
    return %c0_i32, %c0_i32_0 : i32, i32
  }
  func.func @transform_3(%arg0: i32) -> (i32, i32) {
    %c0_i32 = arith.constant 0 : i32
    %c0_i32_0 = arith.constant 0 : i32
    %c0_i32_1 = arith.constant 0 : i32
    return %c0_i32, %c0_i32_0 : i32, i32
  }
  func.func @transform_4(%arg0: i32) -> (i32, i32) {
    %c0_i32 = arith.constant 0 : i32
    %c0_i32_0 = arith.constant 0 : i32
    %c0_i32_1 = arith.constant 0 : i32
    return %c0_i32, %c0_i32_0 : i32, i32
  }
  func.func @transform_5(%arg0: i32) -> (i32, i32) {
    %c0_i32 = arith.constant 0 : i32
    %c0_i32_0 = arith.constant 0 : i32
    %c0_i32_1 = arith.constant 0 : i32
    return %c0_i32, %c0_i32_0 : i32, i32
  }
  func.func @transform_6(%arg0: i32) -> (i32, i32) {
    %c0_i32 = arith.constant 0 : i32
    %c0_i32_0 = arith.constant 0 : i32
    %c0_i32_1 = arith.constant 0 : i32
    return %c0_i32, %c0_i32_0 : i32, i32
  }
  func.func @transform_7(%arg0: i32) -> (i32, i32) {
    %c0_i32 = arith.constant 0 : i32
    %c0_i32_0 = arith.constant 0 : i32
    return %arg0, %c0_i32 : i32, i32
  }
}

</mosaic_0001>

<bundles_post_ra>
// kernel: tpu_custom_call.1
= control target key start
LH: loop header
LB: loop body
LE: loop exit
PB: predicated region body
PF: predicated region fallthrough
CT: control target
= control target key end

     0   :  { %s2194_s24 = smov 0   ;;  %s3008_s0 = inlined_call_operand.vmem [shape: s32[64,8], index: 0, kind: input, shape index: {}]   ;;  %s3009_s1 = inlined_call_operand.vmem [shape: f32[64,32], index: 1, kind: input, shape index: {}]   ;;  %s3010_s2 = inlined_call_operand.vmem [shape: f32[16,32], index: 2, kind: input, shape index: {}]   ;;  %s3011_s3 = inlined_call_operand.vmem [shape: f32[1,16], index: 3, kind: input, shape index: {}]   ;;  %s3012_s4 = inlined_call_operand.vmem [shape: f32[32,32], index: 4, kind: input, shape index: {}]   ;;  %s3013_s5 = inlined_call_operand.vmem [shape: f32[32,32], index: 5, kind: input, shape index: {}]   ;;  %s3014_s6 = inlined_call_operand.vmem [shape: f32[1,32], index: 6, kind: input, shape index: {}]   ;;  %s3015_s7 = inlined_call_operand.vmem [shape: f32[64,32], index: 7, kind: output, shape index: {}]  }
   0x1 LB: > { %s1811_s25 = sadd.s32 4294967295, %s2128_s24   ;;  %p1815_p0 = scmp.ge.s32.totalorder %s2128_s24, 1  ;;  %s2128_s24 = sphi %s2194_s24, %s17_s24  }
   0x2   : > { %p249_p1 = scmp.lt.s32.totalorder %s2128_s24, 3 }
   0x4   : > { %p250_p2 = pnand %p1815_p0, %p249_p1 }
   0x6   : > { %253 = sbr.rel (%p250_p2) target bundleno = 1306 (0x51a), region = 48 }
   0xd   : > { %s1816_s26 = sshll.u32 %s1811_s25, 2  ;;  %v3028_v0 = vmov 2   ;;  %v3024_v4 = vmov 4   ;;  %v3026_v6 = vmov 3   ;;  %v3020_v7 = vmov 6   ;;  %s2140_s10 = smov 127  }
   0xe   : > { %1992 = vset.pattern.permute.xlu0 %v3028_v0  ;;  %p287_p3 = scmp.lt.s32.totalorder %s1816_s26, 7  ;;  %1990 = vset.pattern.permute.xlu1 %v3028_v0  ;;  %v3022_v8 = vmov 5   ;;  %v3018_v9 = vmov 7   ;;  %v3016_v10 = vmov 0   ;;  %v3030_v11 = vmov 1   ;;  %s2141_s11 = smov 126  }
   0xf   : > { %v311_v28 = vlaneseq  ;;  %v2138_v34 = vmov 0.0   ;;  %v2311_v37 = vld [vmem:[%s3011_s3] ss:$0 sm:$0xff]  ;;  %vm347_vm4 = vcmask 130048   ;;  %s2142_s12 = smov 125   ;;  %s2143_s13 = smov 124  }
  0x10   : > { %s3149_s26 = smov (!%p287_p3, %s1816_s26), 7  ;;  %s2144_s14 = smov 123  }
  0x11   : > { %s2204_s27 = sshll.u32 %s3149_s26, 3  ;;  %v2295_v31 = vand.u32 127, %v311_v28  ;;  %s2145_s15 = smov 122  }
  0x12   : > { %s290_s30 = scalar_lea.vmem %s3008_s0, %s2204_s27  ;;  %s2146_s16 = smov 121  }
  0x13   : > { %v2210_v1 = vld [vmem:[%s290_s30 + $0x10] sm:$0xff]  ;;  %v2213_v2 = vld [vmem:[%s290_s30] sm:$0xff]  ;;  %v2216_v3 = vld [vmem:[%s290_s30 + $0x8] sm:$0xff]  ;;  %s2147_s17 = smov 1   ;;  %s2148_s18 = smov 2  }
  0x14   : > { %423 = vperm.xlu0 %1992, %v2210_v1   ;;  %417 = vperm.xlu1 %1990, %v2213_v2   ;;  %v2221_v5 = vld [vmem:[%s290_s30 + $0x18] sm:$0xff]  ;;  %s2149_s19 = smov 3   ;;  %s2150_s20 = smov 4  }
  0x15   : > { %s2151_s21 = smov 5   ;;  %s2152_s22 = smov 6  }
  0x16   : > { %s2153_s23 = smov 7   ;;  %s296_s26 = scalar_lea.vmem %s3009_s1, %s2204_s27 }
  0x17   : > { %s302_s9 = scalar_lea.vmem %s3015_s7, %s2204_s27 }
  0x18   : > { %1995 = vset.pattern.permute.xlu0 %v3024_v4  ;;  %420 = vperm.xlu1 %1990, %v2216_v3  }
  0x19   : > { %508 = vperm.xlu0 %1995, %v2216_v3  }
  0x1c   : > { %1991 = vset.pattern.permute.xlu1 %v3026_v6 }
  0x1d   : > { %1998 = vset.pattern.permute.xlu0 %v3026_v6  ;;  %461 = vperm.xlu1 %1991, %v2213_v2  }
  0x1e   : > { %470 = vperm.xlu0 %1998, %v2221_v5  }
  0x21   : > { %464 = vperm.xlu1 %1991, %v2216_v3  }
  0x22   : > { %2000 = vset.pattern.permute.xlu0 %v3020_v7 }
  0x23   : > { %593 = vperm.xlu0 %2000, %v2213_v2  }
  0x25   : > { %1993 = vset.pattern.permute.xlu1 %v3024_v4 }
  0x26   : > { %505 = vperm.xlu1 %1993, %v2213_v2  }
  0x27   : > { %2002 = vset.pattern.permute.xlu0 %v3022_v8 }
  0x28   : > { %555 = vperm.xlu0 %2002, %v2210_v1  }
  0x2a   : > { %1994 = vset.pattern.permute.xlu1 %v3028_v0 }
  0x2b   : > { %426 = vperm.xlu1 %1994, %v2221_v5  }
  0x2c   : > { %2005 = vset.pattern.permute.xlu0 %v3018_v9 }
  0x2d   : > { %640 = vperm.xlu0 %2005, %v2216_v3  }
  0x2f   : > { %1996 = vset.pattern.permute.xlu1 %v3026_v6 }
  0x30   : > { %467 = vperm.xlu1 %1996, %v2210_v1  }
  0x31   : > { %643 = vperm.xlu0 %2005, %v2210_v1  }
  0x34   : > { %1997 = vset.pattern.permute.xlu1 %v3022_v8 }
  0x35   : > { %2008 = vset.pattern.permute.xlu0 %v3016_v10  ;;  %549 = vperm.xlu1 %1997, %v2213_v2  }
  0x36   : > { %314 = vperm.xlu0 %2008, %v2213_v2  }
  0x39   : > { %552 = vperm.xlu1 %1997, %v2216_v3  }
  0x3a   : > { %323 = vperm.xlu0 %2008, %v2221_v5  }
  0x3d   : > { %1999 = vset.pattern.permute.xlu1 %v3024_v4 }
  0x3e   : > { %2010 = vset.pattern.permute.xlu0 %v3030_v11  ;;  %511 = vperm.xlu1 %1999, %v2210_v1  }
  0x3f   : > { %373 = vperm.xlu0 %2010, %v2213_v2  }
  0x42   : > { %514 = vperm.xlu1 %1999, %v2221_v5  }
  0x43   : > { %376 = vperm.xlu0 %2010, %v2216_v3  }
  0x46   : > { %2001 = vset.pattern.permute.xlu1 %v3020_v7 }
  0x47   : > { %379 = vperm.xlu0 %2010, %v2210_v1   ;;  %596 = vperm.xlu1 %2001, %v2216_v3  }
  0x4b   : > { %382 = vperm.xlu0 %2010, %v2221_v5   ;;  %2003 = vset.pattern.permute.xlu1 %v3018_v9 }
  0x4c   : > { %637 = vperm.xlu1 %2003, %v2213_v2  }
  0x50   : > { %2004 = vset.pattern.permute.xlu1 %v3022_v8 }
  0x51   : > { %558 = vperm.xlu1 %2004, %v2221_v5  }
  0x55   : > { %2006 = vset.pattern.permute.xlu1 %v3020_v7 }
  0x56   : > { %599 = vperm.xlu1 %2006, %v2210_v1  }
  0x5a   : > { %602 = vperm.xlu1 %2006, %v2221_v5  }
  0x5e   : > { %2007 = vset.pattern.permute.xlu1 %v3018_v9 }
  0x5f   : > { %646 = vperm.xlu1 %2007, %v2221_v5  }
  0x63   : > { %2009 = vset.pattern.permute.xlu1 %v3016_v10 }
  0x64   : > { %317 = vperm.xlu1 %2009, %v2216_v3  }
  0x68   : > { %320 = vperm.xlu1 %2009, %v2210_v1  }
  0x93   : > { %v2269_v12 = vpop.permute.xlu0 %423  ;;  %v418_v13 = vpop.permute.xlu1 %417 }
  0x94   : > { %vm428_vm2 = vcmp.eq.s32.totalorder %v418_v13, %v2295_v31  ;;  %vm430_vm9 = vcmp.eq.s32.totalorder %v2269_v12, %v2295_v31 }
  0x95   : > { %v2317_v40 = vsel %vm428_vm2, 1.0, %v2138_v34  ;;  %v2368_v63 = vsel %vm430_vm9, 1.0, %v2138_v34 }
  0x96   : > { %3070 = vst [vmem:[#allocation4_spill] sm:$0xff] %v2317_v40  ;;  %v440_v48 = vmul.f32 %v2317_v40, %v2311_v37  ;;  %3077 = vst [vmem:[#allocation11_spill] sm:$0xff] %v2368_v63 }
  0x97   : > { %v421_v15 = vpop.permute.xlu1 %420 }
  0x98   : > { %v2271_v14 = vpop.permute.xlu0 %508  ;;  %vm429_vm0 = vcmp.eq.s32.totalorder %v421_v15, %v2295_v31  ;;  %v444_v56 = vsel %vm347_vm4, %v440_v48, 0.0 }
  0x99   : > { %v2303_v35 = vsel %vm429_vm0, 1.0, %v2138_v34  ;;  %vm517_vm11 = vcmp.eq.s32.totalorder %v2271_v14, %v2295_v31 }
  0x9a   : > { %3068 = vst [vmem:[#allocation2_spill] sm:$0xff] %v2303_v35  ;;  %v441_v42 = vmul.f32 %v2303_v35, %v2311_v37 }
  0x9c   : > { %v462_v17 = vpop.permute.xlu1 %461  ;;  %v447_v50 = vsel %vm347_vm4, %v441_v42, 0.0 }
  0x9d   : > { %v2273_v16 = vpop.permute.xlu0 %470  ;;  %vm472_vm3 = vcmp.eq.s32.totalorder %v462_v17, %v2295_v31 }
  0x9e   : > { %v2326_v44 = vsel %vm472_vm3, 1.0, %v2138_v34  ;;  %vm475_vm0 = vcmp.eq.s32.totalorder %v2273_v16, %v2295_v31 }
  0x9f   : > { %3071 = vst [vmem:[#allocation5_spill] sm:$0xff] %v2326_v44  ;;  %v484_v51 = vmul.f32 %v2326_v44, %v2311_v37  ;;  %v2420_v16 = vsel %vm475_vm0, 1.0, %v2138_v34 }
  0xa0   : > { %v465_v19 = vpop.permute.xlu1 %464  ;;  %3083 = vst [vmem:[#allocation17_spill] sm:$0xff] %v2420_v16 }
  0xa1   : > { %vm473_vm6 = vcmp.eq.s32.totalorder %v465_v19, %v2295_v31  ;;  %v488_v57 = vsel %vm347_vm4, %v484_v51, 0.0  ;;  %v2377_v19 = vsel %vm517_vm11, 1.0, %v2138_v34 }
  0xa2   : > { %v2275_v18 = vpop.permute.xlu0 %593  ;;  %v2344_v53 = vsel %vm473_vm6, 1.0, %v2138_v34  ;;  %3078 = vst [vmem:[#allocation12_spill] sm:$0xff] %v2377_v19 }
  0xa3   : > { %3073 = vst [vmem:[#allocation7_spill] sm:$0xff] %v2344_v53  ;;  %v485_v59 = vmul.f32 %v2344_v53, %v2311_v37 }
  0xa5   : > { %v506_v20 = vpop.permute.xlu1 %505  ;;  %v491_v13 = vsel %vm347_vm4, %v485_v59, 0.0 }
  0xa6   : > { %vm516_vm8 = vcmp.eq.s32.totalorder %v506_v20, %v2295_v31  ;;  %v442_v20 = vmul.f32 %v2368_v63, %v2311_v37 }
  0xa7   : > { %v2277_v21 = vpop.permute.xlu0 %555  ;;  %v2360_v60 = vsel %vm516_vm8, 1.0, %v2138_v34 }
  0xa8   : > { %3075 = vst [vmem:[#allocation9_spill] sm:$0xff] %v2360_v60  ;;  %v528_v17 = vmul.f32 %v2360_v60, %v2311_v37  ;;  %v450_v42 = vsel %vm347_vm4, %v442_v20, 0.0 }
  0xaa   : > { %v2279_v22 = vpop.permute.xlu1 %426 }
  0xab   : > { %vm431_vm12 = vcmp.eq.s32.totalorder %v2279_v22, %v2295_v31  ;;  %v529_v22 = vmul.f32 %v2377_v19, %v2311_v37 }
  0xac   : > { %v2281_v23 = vpop.permute.xlu0 %640  ;;  %v2388_v28 = vsel %vm431_vm12, 1.0, %v2138_v34 }
  0xad   : > { %3079 = vst [vmem:[#allocation13_spill] sm:$0xff] %v2388_v28  ;;  %vm649_vm8 = vcmp.eq.s32.totalorder %v2281_v23, %v2295_v31 }
  0xaf   : > { %v2285_v25 = vpop.permute.xlu1 %467 }
  0xb0   : > { %v2283_v24 = vpop.permute.xlu0 %643  ;;  %vm474_vm14 = vcmp.eq.s32.totalorder %v2285_v25, %v2295_v31 }
  0xb1   : > { %v2412_v25 = vsel %vm474_vm14, 1.0, %v2138_v34 }
  0xb2   : > { %3081 = vst [vmem:[#allocation15_spill] sm:$0xff] %v2412_v25  ;;  %v486_v51 = vmul.f32 %v2412_v25, %v2311_v37 }
  0xb4   : > { %v2289_v27 = vpop.permute.xlu1 %549 }
  0xb5   : > { %v2287_v26 = vpop.permute.xlu0 %314  ;;  %vm560_vm13 = vcmp.eq.s32.totalorder %v2289_v27, %v2295_v31  ;;  %v443_v27 = vmul.f32 %v2388_v28, %v2311_v37 }
  0xb6   : > { %vm325_vm0 = vcmp.eq.s32.totalorder %v2287_v26, %v2295_v31 }
  0xb7   : > { %v453_v48 = vsel %vm347_vm4, %v443_v27, 0.0 }
  0xb8   : > { %v2293_v30 = vpop.permute.xlu1 %552 }
  0xb9   : > { %v2291_v29 = vpop.permute.xlu0 %323  ;;  %vm561_vm15 = vcmp.eq.s32.totalorder %v2293_v30, %v2295_v31 }
  0xba   : > { %v2415_v30 = vsel %vm561_vm15, 1.0, %v2138_v34  ;;  %vm650_vm15 = vcmp.eq.s32.totalorder %v2283_v24, %v2295_v31 }
  0xbb   : > { %3082 = vst [vmem:[#allocation16_spill] sm:$0xff] %v2415_v30 }
  0xbd   : > { %v2298_v33 = vpop.permute.xlu1 %511 }
  0xbe   : > { %v374_v32 = vpop.permute.xlu0 %373  ;;  %vm518_vm3 = vcmp.eq.s32.totalorder %v2298_v33, %v2295_v31 }
  0xbf   : > { %vm384_vm1 = vcmp.eq.s32.totalorder %v374_v32, %v2295_v31 }
  0xc0   : > { %v2306_v36 = vsel %vm384_vm1, 1.0, %v2138_v34  ;;  %vm604_vm1 = vcmp.eq.s32.totalorder %v2275_v18, %v2295_v31 }
  0xc1   : > { %3069 = vst [vmem:[#allocation3_spill] sm:$0xff] %v2306_v36  ;;  %v396_v38 = vmul.f32 %v2306_v36, %v2311_v37  ;;  %v2323_v43 = vpop.permute.xlu1 %514 }
  0xc2   : > { %v377_v39 = vpop.permute.xlu0 %376  ;;  %vm519_vm6 = vcmp.eq.s32.totalorder %v2323_v43, %v2295_v31 }
  0xc3   : > { %vm385_vm5 = vcmp.eq.s32.totalorder %v377_v39, %v2295_v31  ;;  %v400_v41 = vsel %vm347_vm4, %v396_v38, 0.0  ;;  %v532_v38 = vsel %vm347_vm4, %v528_v17, 0.0  ;;  %v2395_v39 = vsel %vm560_vm13, 1.0, %v2138_v34 }
  0xc4   : > { %v2329_v45 = vsel %vm385_vm5, 1.0, %v2138_v34  ;;  %401 = vadd.xlane.f32.xlu1 %v400_v41  ;;  %3080 = vst [vmem:[#allocation14_spill] sm:$0xff] %v2395_v39 }
  0xc5   : > { %3072 = vst [vmem:[#allocation6_spill] sm:$0xff] %v2329_v45  ;;  %v397_v46 = vmul.f32 %v2329_v45, %v2311_v37 }
  0xc6   : > { %v380_v47 = vpop.permute.xlu0 %379  ;;  %v2341_v52 = vpop.permute.xlu1 %596 }
  0xc7   : > { %vm386_vm7 = vcmp.eq.s32.totalorder %v380_v47, %v2295_v31  ;;  %v403_v49 = vsel %vm347_vm4, %v397_v46, 0.0  ;;  %v535_v46 = vsel %vm347_vm4, %v529_v22, 0.0  ;;  %v572_v47 = vmul.f32 %v2395_v39, %v2311_v37 }
  0xc8   : > { %v2347_v54 = vsel %vm386_vm7, 1.0, %v2138_v34  ;;  %404 = vadd.xlane.f32.xlu0 %v403_v49  ;;  %448 = vadd.xlane.f32.xlu1 %v447_v50  ;;  %vm605_vm2 = vcmp.eq.s32.totalorder %v2341_v52, %v2295_v31  ;;  %v487_v52 = vmul.f32 %v2420_v16, %v2311_v37  ;;  %vm562_vm7 = vcmp.eq.s32.totalorder %v2277_v21, %v2295_v31 }
  0xc9   : > { %3074 = vst [vmem:[#allocation8_spill] sm:$0xff] %v2347_v54  ;;  %v398_v58 = vmul.f32 %v2347_v54, %v2311_v37  ;;  %v576_v50 = vsel %vm347_vm4, %v572_v47, 0.0  ;;  %v2436_v18 = vsel %vm605_vm2, 1.0, %v2138_v34  ;;  %v2470_v27 = vsel %vm562_vm7, 1.0, %v2138_v34 }
  0xca   : > { %v383_v55 = vpop.permute.xlu0 %382  ;;  %3085 = vst [vmem:[#allocation19_spill] sm:$0xff] %v2436_v18  ;;  %v617_v33 = vmul.f32 %v2436_v18, %v2311_v37  ;;  %3089 = vst [vmem:[#allocation23_spill] sm:$0xff] %v2470_v27  ;;  %vm360_vm2 = vcmp.ne.s32.totalorder %v2213_v2, 0 }
  0xcb   : > { %vm387_vm10 = vcmp.eq.s32.totalorder %v383_v55, %v2295_v31  ;;  %v638_v62 = vpop.permute.xlu1 %637  ;;  %v406_v12 = vsel %vm347_vm4, %v398_v58, 0.0  ;;  %v573_v55 = vmul.f32 %v2415_v30, %v2311_v37 }
  0xcc   : > { %v2363_v61 = vsel %vm387_vm10, 1.0, %v2138_v34  ;;  %445 = vadd.xlane.f32.xlu0 %v444_v56  ;;  %489 = vadd.xlane.f32.xlu1 %v488_v57  ;;  %v2431_v56 = vsel %vm604_vm1, 1.0, %v2138_v34  ;;  %v494_v57 = vsel %vm347_vm4, %v486_v51, 0.0  ;;  %vm648_vm5 = vcmp.eq.s32.totalorder %v638_v62, %v2295_v31 }
  0xcd   : > { %3076 = vst [vmem:[#allocation10_spill] sm:$0xff] %v2363_v61  ;;  %v399_v15 = vmul.f32 %v2363_v61, %v2311_v37  ;;  %3084 = vst [vmem:[#allocation18_spill] sm:$0xff] %v2431_v56  ;;  %v579_v58 = vsel %vm347_vm4, %v573_v55, 0.0  ;;  %v616_v59 = vmul.f32 %v2431_v56, %v2311_v37  ;;  %v497_v62 = vsel %vm347_vm4, %v487_v52, 0.0 }
  0xce   : > { %vm328_vm1 = vcmp.eq.s32.totalorder %v2291_v29, %v2295_v31 }
  0xcf   : > { %v409_v32 = vsel %vm347_vm4, %v399_v15, 0.0  ;;  %v2453_v15 = vsel %vm648_vm5, 1.0, %v2138_v34  ;;  %v620_v17 = vsel %vm347_vm4, %v616_v59, 0.0  ;;  %v2541_v26 = vsel %vm328_vm1, 1.0, %v2138_v34 }
  0xd0   : > { %407 = vadd.xlane.f32.xlu0 %v406_v12  ;;  %492 = vadd.xlane.f32.xlu1 %v491_v13  ;;  %v2383_v14 = vpop.permute.xlu1 %558  ;;  %v2446_v13 = vsel %vm518_vm3, 1.0, %v2138_v34  ;;  %3087 = vst [vmem:[#allocation21_spill] sm:$0xff] %v2453_v15  ;;  %v660_v22 = vmul.f32 %v2453_v15, %v2311_v37  ;;  %3099 = vst [vmem:[#allocation33_spill] sm:$0xff] %v2541_v26  ;;  %vm361_vm3 = vcmp.ne.s32.totalorder %v2216_v3, 0  ;;  %vm362_vm5 = vcmp.ne.s32.totalorder %v2210_v1, 0 }
  0xd1   : > { %3086 = vst [vmem:[#allocation20_spill] sm:$0xff] %v2446_v13  ;;  %v530_v20 = vmul.f32 %v2446_v13, %v2311_v37  ;;  %vm563_vm10 = vcmp.eq.s32.totalorder %v2383_v14, %v2295_v31 }
  0xd2   : > { %v664_v47 = vsel %vm347_vm4, %v660_v22, 0.0  ;;  %v2498_v55 = vsel %vm563_vm10, 1.0, %v2138_v34 }
  0xd3   : > { %3093 = vst [vmem:[#allocation27_spill] sm:$0xff] %v2498_v55 }
  0xd4   : > { %410 = vadd.xlane.f32.xlu0 %v409_v32  ;;  %533 = vadd.xlane.f32.xlu1 %v532_v38  ;;  %v2462_v32 = vsel %vm519_vm6, 1.0, %v2138_v34  ;;  %v623_v38 = vsel %vm347_vm4, %v617_v33, 0.0  ;;  %vm363_vm6 = vcmp.ne.s32.totalorder %v2221_v5, 0 }
  0xd5   : > { %v2403_v41 = vpop.permute.xlu1 %599  ;;  %3088 = vst [vmem:[#allocation22_spill] sm:$0xff] %v2462_v32  ;;  %v531_v21 = vmul.f32 %v2462_v32, %v2311_v37 }
  0xd6   : > { %vm606_vm12 = vcmp.eq.s32.totalorder %v2403_v41, %v2295_v31 }
  0xd7   : > { %v541_v51 = vsel %vm347_vm4, %v531_v21, 0.0 }
  0xd8   : > { %451 = vadd.xlane.f32.xlu0 %v450_v42  ;;  %536 = vadd.xlane.f32.xlu1 %v535_v46  ;;  %v538_v42 = vsel %vm347_vm4, %v530_v20, 0.0  ;;  %v2477_v46 = vsel %vm649_vm8, 1.0, %v2138_v34 }
  0xd9   : > { %v603_v49 = vpop.permute.xlu1 %602  ;;  %3090 = vst [vmem:[#allocation24_spill] sm:$0xff] %v2477_v46  ;;  %v661_v14 = vmul.f32 %v2477_v46, %v2311_v37 }
  0xda   : > { %vm607_vm9 = vcmp.eq.s32.totalorder %v603_v49, %v2295_v31 }
  0xdb   : > { %v667_v59 = vsel %vm347_vm4, %v661_v14, 0.0 }
  0xdc   : > { %454 = vadd.xlane.f32.xlu0 %v453_v48  ;;  %577 = vadd.xlane.f32.xlu1 %v576_v50  ;;  %v2484_v48 = vsel %vm607_vm9, 1.0, %v2138_v34  ;;  %v574_v50 = vmul.f32 %v2470_v27, %v2311_v37 }
  0xdd   : > { %3091 = vst [vmem:[#allocation25_spill] sm:$0xff] %v2484_v48  ;;  %v619_v52 = vmul.f32 %v2484_v48, %v2311_v37 }
  0xde   : > { %v647_v12 = vpop.permute.xlu1 %646 }
  0xdf   : > { %vm651_vm13 = vcmp.eq.s32.totalorder %v647_v12, %v2295_v31  ;;  %v575_v12 = vmul.f32 %v2498_v55, %v2311_v37  ;;  %v629_v33 = vsel %vm347_vm4, %v619_v52, 0.0 }
  0xe0   : > { %495 = vadd.xlane.f32.xlu0 %v494_v57  ;;  %580 = vadd.xlane.f32.xlu1 %v579_v58  ;;  %v2503_v57 = vsel %vm606_vm12, 1.0, %v2138_v34  ;;  %v2506_v41 = vsel %vm651_vm13, 1.0, %v2138_v34  ;;  %v582_v58 = vsel %vm347_vm4, %v574_v50, 0.0  ;;  %v346_v50 = vmul.f32 %v2311_v37, %v2541_v26 }
  0xe1   : > { %3094 = vst [vmem:[#allocation28_spill] sm:$0xff] %v2503_v57  ;;  %3095 = vst [vmem:[#allocation29_spill] sm:$0xff] %v2506_v41 }
  0xe2   : > { %v357_v14 = vsel %vm347_vm4, %v346_v50, 0.0 }
  0xe3   : > { %v318_v43 = vpop.permute.xlu1 %317 }
  0xe4   : > { %498 = vadd.xlane.f32.xlu0 %v497_v62  ;;  %621 = vadd.xlane.f32.xlu1 %v620_v17  ;;  %vm326_vm14 = vcmp.eq.s32.totalorder %v318_v43, %v2295_v31  ;;  %v618_v62 = vmul.f32 %v2503_v57, %v2311_v37  ;;  %v663_v17 = vmul.f32 %v2506_v41, %v2311_v37  ;;  %v2525_v43 = vsel %vm650_vm15, 1.0, %v2138_v34 }
  0xe5   : > { %v2521_v20 = vsel %vm326_vm14, 1.0, %v2138_v34  ;;  %3097 = vst [vmem:[#allocation31_spill] sm:$0xff] %v2525_v43  ;;  %v662_v21 = vmul.f32 %v2525_v43, %v2311_v37 }
  0xe6   : > { %3096 = vst [vmem:[#allocation30_spill] sm:$0xff] %v2521_v20  ;;  %v626_v24 = vsel %vm347_vm4, %v618_v62, 0.0  ;;  %v673_v22 = vsel %vm347_vm4, %v663_v17, 0.0 }
  0xe7   : > { %v321_v23 = vpop.permute.xlu1 %320 }
  0xe8   : > { %539 = vadd.xlane.f32.xlu0 %v538_v42  ;;  %624 = vadd.xlane.f32.xlu1 %v623_v38  ;;  %vm327_vm11 = vcmp.eq.s32.totalorder %v321_v23, %v2295_v31  ;;  %v585_v38 = vsel %vm347_vm4, %v575_v12, 0.0  ;;  %v344_v42 = vmul.f32 %v2311_v37, %v2521_v20  ;;  %v2538_v23 = vsel %vm325_vm0, 1.0, %v2138_v34 }
  0xe9   : > { %v2489_v49 = vsel %vm327_vm11, 1.0, %v2138_v34  ;;  %3098 = vst [vmem:[#allocation32_spill] sm:$0xff] %v2538_v23  ;;  %v670_v31 = vsel %vm347_vm4, %v662_v21, 0.0 }
  0xea   : > { %3092 = vst [vmem:[#allocation26_spill] sm:$0xff] %v2489_v49  ;;  %v351_v29 = vsel %vm347_vm4, %v344_v42, 0.0 }
  0xec   : > { %542 = vadd.xlane.f32.xlu0 %v541_v51  ;;  %665 = vadd.xlane.f32.xlu1 %v664_v47  ;;  %v343_v47 = vmul.f32 %v2311_v37, %v2538_v23  ;;  %v345_v51 = vmul.f32 %v2311_v37, %v2489_v49 }
  0xee   : > { %v348_v34 = vsel %vm347_vm4, %v343_v47, 0.0  ;;  %v354_v52 = vsel %vm347_vm4, %v345_v51, 0.0 }
  0xf0   : > { %583 = vadd.xlane.f32.xlu0 %v582_v58  ;;  %668 = vadd.xlane.f32.xlu1 %v667_v59  ;;  %v2139_v58 = vmov -10000.0  }
  0xf1   : > { %v2555_v59 = vsel %vm360_vm2, 0.0, %v2139_v58  ;;  %v2561_v37 = vsel %vm361_vm3, 0.0, %v2139_v58  ;;  %v2582_v21 = vsel %vm362_vm5, 0.0, %v2139_v58  ;;  %v2595_v50 = vsel %vm363_vm6, 0.0, %v2139_v58 }
  0xf4   : > { %586 = vadd.xlane.f32.xlu0 %v585_v38  ;;  %630 = vadd.xlane.f32.xlu1 %v629_v33 }
  0xf8   : > { %627 = vadd.xlane.f32.xlu0 %v626_v24  ;;  %674 = vadd.xlane.f32.xlu1 %v673_v22 }
  0xfc   : > { %671 = vadd.xlane.f32.xlu0 %v670_v31  ;;  %352 = vadd.xlane.f32.xlu1 %v351_v29 }
 0x100   : > { %349 = vadd.xlane.f32.xlu0 %v348_v34  ;;  %358 = vadd.xlane.f32.xlu1 %v357_v14 }
 0x104   : > { %355 = vadd.xlane.f32.xlu0 %v354_v52 }
 0x151   : > { %v402_v12 = vpop.xlane.xlu1 %401 }
 0x152   : > { %v2559_v33 = vadd.f32 %v402_v12, %v2555_v59 }
 0x154   : > { %684 = vrot.lane.b32.xlu0 %v2559_v33, %s2140_s10 }
 0x155   : > { %v405_v62 = vpop.xlane.xlu0 %404  ;;  %v449_v17 = vpop.xlane.xlu1 %448 }
 0x156   : > { %v2566_v38 = vadd.f32 %v405_v62, %v2561_v37  ;;  %v2569_v2 = vadd.f32 %v449_v17, %v2561_v37 }
 0x158   : > { %686 = vrot.lane.b32.xlu1 %v2566_v38, %s2140_s10  ;;  %706 = vrot.lane.b32.xlu0 %v2569_v2, %s2141_s11 }
 0x159   : > { %v446_v3 = vpop.xlane.xlu0 %445  ;;  %v490_v24 = vpop.xlane.xlu1 %489 }
 0x15a   : > { %v2577_v22 = vadd.f32 %v446_v3, %v2555_v59  ;;  %v2580_v42 = vadd.f32 %v490_v24, %v2555_v59 }
 0x15c   : > { %704 = vrot.lane.b32.xlu1 %v2577_v22, %s2141_s11  ;;  %724 = vrot.lane.b32.xlu0 %v2580_v42, %s2142_s12 }
 0x15d   : > { %v408_v1 = vpop.xlane.xlu0 %407  ;;  %v493_v29 = vpop.xlane.xlu1 %492 }
 0x15e   : > { %v2590_v31 = vadd.f32 %v408_v1, %v2582_v21  ;;  %v2593_v47 = vadd.f32 %v493_v29, %v2561_v37 }
 0x160   : > { %688 = vrot.lane.b32.xlu1 %v2590_v31, %s2140_s10  ;;  %726 = vrot.lane.b32.xlu0 %v2593_v47, %s2142_s12 }
 0x161   : > { %v411_v51 = vpop.xlane.xlu0 %410  ;;  %v534_v34 = vpop.xlane.xlu1 %533 }
 0x162   : > { %v2602_v5 = vadd.f32 %v411_v51, %v2595_v50  ;;  %v2605_v14 = vadd.f32 %v534_v34, %v2555_v59 }
 0x164   : > { %690 = vrot.lane.b32.xlu1 %v2602_v5, %s2140_s10  ;;  %744 = vrot.lane.b32.xlu0 %v2605_v14, %s2143_s13 }
 0x165   : > { %v452_v52 = vpop.xlane.xlu0 %451  ;;  %v537_v58 = vpop.xlane.xlu1 %536 }
 0x166   : > { %v2612_v12 = vadd.f32 %v452_v52, %v2582_v21  ;;  %v2615_v62 = vadd.f32 %v537_v58, %v2561_v37 }
 0x168   : > { %708 = vrot.lane.b32.xlu1 %v2612_v12, %s2141_s11  ;;  %746 = vrot.lane.b32.xlu0 %v2615_v62, %s2143_s13 }
 0x169   : > { %v455_v17 = vpop.xlane.xlu0 %454  ;;  %v578_v3 = vpop.xlane.xlu1 %577 }
 0x16a   : > { %v2622_v24 = vadd.f32 %v455_v17, %v2595_v50  ;;  %v2625_v1 = vadd.f32 %v578_v3, %v2555_v59 }
 0x16c   : > { %710 = vrot.lane.b32.xlu1 %v2622_v24, %s2141_s11  ;;  %764 = vrot.lane.b32.xlu0 %v2625_v1, %s2144_s14 }
 0x16d   : > { %v496_v29 = vpop.xlane.xlu0 %495  ;;  %v581_v51 = vpop.xlane.xlu1 %580 }
 0x16e   : > { %v2632_v34 = vadd.f32 %v496_v29, %v2582_v21  ;;  %v2635_v52 = vadd.f32 %v581_v51, %v2561_v37 }
 0x170   : > { %728 = vrot.lane.b32.xlu1 %v2632_v34, %s2142_s12  ;;  %766 = vrot.lane.b32.xlu0 %v2635_v52, %s2144_s14 }
 0x171   : > { %v499_v58 = vpop.xlane.xlu0 %498  ;;  %v622_v17 = vpop.xlane.xlu1 %621 }
 0x172   : > { %v2642_v3 = vadd.f32 %v499_v58, %v2595_v50  ;;  %v2645_v10 = vadd.f32 %v622_v17, %v2555_v59 }
 0x174   : > { %730 = vrot.lane.b32.xlu1 %v2642_v3, %s2142_s12  ;;  %784 = vrot.lane.b32.xlu0 %v2645_v10, %s2145_s15 }
 0x175   : > { %v540_v29 = vpop.xlane.xlu0 %539  ;;  %v625_v51 = vpop.xlane.xlu1 %624 }
 0x176   : > { %v2652_v9 = vadd.f32 %v540_v29, %v2582_v21  ;;  %v2655_v7 = vadd.f32 %v625_v51, %v2561_v37 }
 0x178   : > { %748 = vrot.lane.b32.xlu1 %v2652_v9, %s2143_s13  ;;  %786 = vrot.lane.b32.xlu0 %v2655_v7, %s2145_s15 }
 0x179   : > { %v543_v58 = vpop.xlane.xlu0 %542  ;;  %v666_v17 = vpop.xlane.xlu1 %665 }
 0x17a   : > { %v2662_v8 = vadd.f32 %v543_v58, %v2595_v50  ;;  %v2665_v4 = vadd.f32 %v666_v17, %v2555_v59 }
 0x17c   : > { %750 = vrot.lane.b32.xlu1 %v2662_v8, %s2143_s13  ;;  %804 = vrot.lane.b32.xlu0 %v2665_v4, %s2146_s16 }
 0x17d   : > { %v584_v29 = vpop.xlane.xlu0 %583  ;;  %v669_v51 = vpop.xlane.xlu1 %668 }
 0x17e   : > { %v2672_v6 = vadd.f32 %v584_v29, %v2582_v21  ;;  %v2675_v0 = vadd.f32 %v669_v51, %v2561_v37 }
 0x180   : > { %768 = vrot.lane.b32.xlu1 %v2672_v6, %s2144_s14  ;;  %806 = vrot.lane.b32.xlu0 %v2675_v0, %s2146_s16 }
 0x181   : > { %v587_v58 = vpop.xlane.xlu0 %586  ;;  %v631_v17 = vpop.xlane.xlu1 %630 }
 0x182   : > { %v2682_v11 = vadd.f32 %v587_v58, %v2595_v50  ;;  %v2685_v41 = vadd.f32 %v631_v17, %v2595_v50 }
 0x184   : > { %3100 = vst [vmem:[#allocation34_spill] sm:$0xff] %v2682_v11  ;;  %3101 = vst [vmem:[#allocation35_spill] sm:$0xff] %v2685_v41  ;;  %770 = vrot.lane.b32.xlu1 %v2682_v11, %s2144_s14  ;;  %790 = vrot.lane.b32.xlu0 %v2685_v41, %s2145_s15 }
 0x185   : > { %v628_v29 = vpop.xlane.xlu0 %627  ;;  %v675_v51 = vpop.xlane.xlu1 %674 }
 0x186   : > { %v2692_v48 = vadd.f32 %v628_v29, %v2582_v21  ;;  %v2695_v55 = vadd.f32 %v675_v51, %v2595_v50 }
 0x188   : > { %3102 = vst [vmem:[#allocation36_spill] sm:$0xff] %v2692_v48  ;;  %3103 = vst [vmem:[#allocation37_spill] sm:$0xff] %v2695_v55  ;;  %788 = vrot.lane.b32.xlu1 %v2692_v48, %s2145_s15  ;;  %810 = vrot.lane.b32.xlu0 %v2695_v55, %s2146_s16 }
 0x189   : > { %v672_v58 = vpop.xlane.xlu0 %671  ;;  %v353_v32 = vpop.xlane.xlu1 %352 }
 0x18a   : > { %v2702_v17 = vadd.f32 %v672_v58, %v2582_v21  ;;  %v2711_v39 = vadd.f32 %v2561_v37, %v353_v32 }
 0x18c   : > { %808 = vrot.lane.b32.xlu1 %v2702_v17, %s2146_s16 }
 0x18d   : > { %v350_v43 = vpop.xlane.xlu0 %349  ;;  %v359_v57 = vpop.xlane.xlu1 %358 }
 0x18e   : > { %v2707_v56 = vadd.f32 %v2555_v59, %v350_v43  ;;  %v2715_v32 = vadd.f32 %v2595_v50, %v359_v57 }
 0x191   : > { %v356_v29 = vpop.xlane.xlu0 %355 }
 0x1c6   : > { %v685_v16 = vpop.permute.xlu0 %684 }
 0x1c7   : > { %v696_v54 = vmax.f32 %v2707_v56, %v685_v16 }
 0x1ca   : > { %v687_v51 = vpop.permute.xlu1 %686  ;;  %v707_v28 = vpop.permute.xlu0 %706 }
 0x1cb   : > { %v697_v60 = vmax.f32 %v2711_v39, %v687_v51 }
 0x1cd   : > { %v717_v20 = vmax.f32 %v697_v60, %v707_v28 }
 0x1ce   : > { %v705_v26 = vpop.permute.xlu1 %704  ;;  %v725_v27 = vpop.permute.xlu0 %724 }
 0x1cf   : > { %v716_v19 = vmax.f32 %v696_v54, %v705_v26  ;;  %v2718_v54 = vadd.f32 %v2582_v21, %v356_v29 }
 0x1d1   : > { %v736_v35 = vmax.f32 %v716_v19, %v725_v27 }
 0x1d2   : > { %v689_v61 = vpop.permute.xlu1 %688  ;;  %v727_v13 = vpop.permute.xlu0 %726 }
 0x1d3   : > { %v737_v36 = vmax.f32 %v717_v20, %v727_v13 }
 0x1d6   : > { %v691_v46 = vpop.permute.xlu1 %690  ;;  %v745_v15 = vpop.permute.xlu0 %744 }
 0x1d7   : > { %v756_v40 = vmax.f32 %v736_v35, %v745_v15 }
 0x1da   : > { %v709_v25 = vpop.permute.xlu1 %708  ;;  %v747_v63 = vpop.permute.xlu0 %746 }
 0x1db   : > { %v757_v59 = vmax.f32 %v737_v36, %v747_v63  ;;  %v698_v36 = vmax.f32 %v2718_v54, %v689_v61 }
 0x1dd   : > { %v718_v19 = vmax.f32 %v698_v36, %v709_v25 }
 0x1de   : > { %v711_v58 = vpop.permute.xlu1 %710  ;;  %v765_v49 = vpop.permute.xlu0 %764 }
 0x1df   : > { %v776_v43 = vmax.f32 %v756_v40, %v765_v49 }
 0x1e2   : > { %v729_v18 = vpop.permute.xlu1 %728  ;;  %v767_v30 = vpop.permute.xlu0 %766 }
 0x1e3   : > { %v777_v48 = vmax.f32 %v757_v59, %v767_v30 }
 0x1e6   : > { %v731_v53 = vpop.permute.xlu1 %730  ;;  %v785_v44 = vpop.permute.xlu0 %784 }
 0x1e7   : > { %v796_v55 = vmax.f32 %v776_v43, %v785_v44  ;;  %v699_v44 = vmax.f32 %v2715_v32, %v691_v46  ;;  %v3104_v43 = vmov 1  }
 0x1e9   : > { %v719_v28 = vmax.f32 %v699_v44, %v711_v58 }
 0x1ea   : > { %v749_v23 = vpop.permute.xlu1 %748  ;;  %v787_v45 = vpop.permute.xlu0 %786 }
 0x1eb   : > { %v797_v26 = vmax.f32 %v777_v48, %v787_v45  ;;  %v739_v13 = vmax.f32 %v719_v28, %v731_v53 }
 0x1ee   : > { %v751_v16 = vpop.permute.xlu1 %750  ;;  %v805_v41 = vpop.permute.xlu0 %804 }
 0x1ef   : > { %v816_v11 = vmax.f32 %v796_v55, %v805_v41  ;;  %v759_v27 = vmax.f32 %v739_v13, %v751_v16 }
 0x1f1   : > { %v820_v60 = vsub.f32 %v2707_v56, %v816_v11  ;;  %868 = vrot.lane.b32.xlu1 %v816_v11, %s2147_s17  ;;  %v738_v56 = vmax.f32 %v718_v19, %v729_v18 }
 0x1f2   : > { %v769_v35 = vpop.permute.xlu1 %768  ;;  %v807_v40 = vpop.permute.xlu0 %806 }
 0x1f3   : > { %v817_v63 = vmax.f32 %v797_v26, %v807_v40  ;;  %v758_v15 = vmax.f32 %v738_v56, %v749_v23  ;;  %v824_v53 = vmul.f32 1.442695, %v820_v60 }
 0x1f5   : > { %v821_v30 = vsub.f32 %v2711_v39, %v817_v63  ;;  %870 = vrot.lane.b32.xlu0 %v817_v63, %s2147_s17  ;;  %936 = vrot.lane.b32.xlu1 %v816_v11, %s2148_s18  ;;  %v778_v61 = vmax.f32 %v758_v15, %v769_v35  ;;  %2034 = vpow2.f32 %v824_v53 }
 0x1f6   : > { %v771_v45 = vpop.permute.xlu1 %770  ;;  %v791_v48 = vpop.permute.xlu0 %790 }
 0x1f7   : > { %v779_v55 = vmax.f32 %v759_v27, %v771_v45  ;;  %v826_v18 = vmul.f32 1.442695, %v821_v30 }
 0x1f9   : > { %938 = vrot.lane.b32.xlu0 %v817_v63, %s2148_s18  ;;  %v799_v57 = vmax.f32 %v779_v55, %v791_v48  ;;  %2036 = vpow2.f32 %v826_v18 }
 0x1fa   : > { %v789_v49 = vpop.permute.xlu1 %788  ;;  %v811_v41 = vpop.permute.xlu0 %810 }
 0x1fb   : > { %v798_v46 = vmax.f32 %v778_v61, %v789_v49  ;;  %v819_v20 = vmax.f32 %v799_v57, %v811_v41 }
 0x1fd   : > { %1004 = vrot.lane.b32.xlu0 %v816_v11, %s2149_s19  ;;  %v823_v37 = vsub.f32 %v2715_v32, %v819_v20 }
 0x1fe   : > { %v809_v25 = vpop.permute.xlu1 %808 }
 0x1ff   : > { %v818_v39 = vmax.f32 %v798_v46, %v809_v25  ;;  %v830_v50 = vmul.f32 1.442695, %v823_v37  ;;  %v3106_v37 = vmov 3  }
 0x201   : > { %1006 = vrot.lane.b32.xlu0 %v817_v63, %s2149_s19  ;;  %872 = vrot.lane.b32.xlu1 %v818_v39, %s2147_s17  ;;  %v822_v23 = vsub.f32 %v2718_v54, %v818_v39 }
 0x203   : > { %v828_v21 = vmul.f32 1.442695, %v822_v23 }
 0x205   : > { %1072 = vrot.lane.b32.xlu0 %v816_v11, %s2150_s20  ;;  %874 = vrot.lane.b32.xlu1 %v819_v20, %s2147_s17  ;;  %2038 = vpow2.f32 %v828_v21 }
 0x206   : > { %2040 = vpow2.f32 %v830_v50 }
 0x209   : > { %1074 = vrot.lane.b32.xlu0 %v817_v63, %s2150_s20  ;;  %940 = vrot.lane.b32.xlu1 %v818_v39, %s2148_s18 }
 0x20d   : > { %1140 = vrot.lane.b32.xlu0 %v816_v11, %s2151_s21  ;;  %942 = vrot.lane.b32.xlu1 %v819_v20, %s2148_s18 }
 0x211   : > { %1142 = vrot.lane.b32.xlu0 %v817_v63, %s2151_s21  ;;  %1008 = vrot.lane.b32.xlu1 %v818_v39, %s2149_s19 }
 0x215   : > { %1208 = vrot.lane.b32.xlu0 %v816_v11, %s2152_s22  ;;  %1010 = vrot.lane.b32.xlu1 %v819_v20, %s2149_s19 }
 0x219   : > { %1210 = vrot.lane.b32.xlu0 %v817_v63, %s2152_s22  ;;  %1076 = vrot.lane.b32.xlu1 %v818_v39, %s2150_s20 }
 0x21d   : > { %1276 = vrot.lane.b32.xlu0 %v816_v11, %s2153_s23  ;;  %1078 = vrot.lane.b32.xlu1 %v819_v20, %s2150_s20  ;;  %v2730_v11 = vpop.eup %2034 }
 0x21e   : > { %v2733_v29 = vpop.eup %2036 }
 0x21f   : > { %v2736_v51 = vpop.eup %2038 }
 0x220   : > { %v2739_v58 = vpop.eup %2040 }
 0x221   : > { %1278 = vrot.lane.b32.xlu0 %v817_v63, %s2153_s23  ;;  %1144 = vrot.lane.b32.xlu1 %v818_v39, %s2151_s21 }
 0x225   : > { %1214 = vrot.lane.b32.xlu0 %v819_v20, %s2152_s22  ;;  %1146 = vrot.lane.b32.xlu1 %v819_v20, %s2151_s21 }
 0x229   : > { %1282 = vrot.lane.b32.xlu0 %v819_v20, %s2153_s23  ;;  %1212 = vrot.lane.b32.xlu1 %v818_v39, %s2152_s22 }
 0x22d   : > { %1280 = vrot.lane.b32.xlu1 %v818_v39, %s2153_s23 }
 0x231   : > { %838 = vperm.xlu1 %2009, %v2730_v11  }
 0x235   : > { %843 = vperm.xlu1 %2009, %v2733_v29  }
 0x239   : > { %848 = vperm.xlu1 %2009, %v2736_v51  }
 0x23d   : > { %853 = vperm.xlu1 %2009, %v2739_v58  }
 0x241   : > { %2011 = vset.pattern.permute.xlu1 %v3104_v43 }
 0x263   : > { %v869_v59 = vpop.permute.xlu1 %868 }
 0x264   : > { %v880_v16 = vsub.f32 %v2559_v33, %v869_v59 }
 0x266   : > { %v884_v32 = vmul.f32 1.442695, %v880_v16 }
 0x267   : > { %v871_v54 = vpop.permute.xlu0 %870  ;;  %v937_v26 = vpop.permute.xlu1 %936 }
 0x268   : > { %2042 = vpow2.f32 %v884_v32  ;;  %v881_v60 = vsub.f32 %v2566_v38, %v871_v54  ;;  %v948_v35 = vsub.f32 %v2577_v22, %v937_v26 }
 0x26a   : > { %v886_v40 = vmul.f32 1.442695, %v881_v60  ;;  %v952_v36 = vmul.f32 1.442695, %v948_v35 }
 0x26b   : > { %v939_v44 = vpop.permute.xlu0 %938 }
 0x26c   : > { %2044 = vpow2.f32 %v886_v40  ;;  %v949_v63 = vsub.f32 %v2569_v2, %v939_v44 }
 0x26d   : > { %2046 = vpow2.f32 %v952_v36  ;;  %v3107_v36 = vmov 4  }
 0x26e   : > { %v954_v19 = vmul.f32 1.442695, %v949_v63 }
 0x26f   : > { %v1005_v28 = vpop.permute.xlu0 %1004 }
 0x270   : > { %2048 = vpow2.f32 %v954_v19  ;;  %v1016_v33 = vsub.f32 %v2580_v42, %v1005_v28  ;;  %v3105_v42 = vmov 2  }
 0x272   : > { %v2748_v30 = vpop.eup %2042  ;;  %v1020_v45 = vmul.f32 1.442695, %v1016_v33 }
 0x273   : > { %v1007_v56 = vpop.permute.xlu0 %1006  ;;  %913 = vperm.xlu0 %2010, %v2748_v30   ;;  %v873_v38 = vpop.permute.xlu1 %872 }
 0x274   : > { %v1017_v22 = vsub.f32 %v2593_v47, %v1007_v56  ;;  %v882_v13 = vsub.f32 %v2590_v31, %v873_v38  ;;  %2050 = vpow2.f32 %v1020_v45 }
 0x276   : > { %v2753_v15 = vpop.eup %2044  ;;  %v1022_v2 = vmul.f32 1.442695, %v1017_v22  ;;  %v888_v27 = vmul.f32 1.442695, %v882_v13 }
 0x277   : > { %v2755_v48 = vpop.eup %2046  ;;  %v1073_v49 = vpop.permute.xlu0 %1072  ;;  %2012 = vset.pattern.permute.xlu0 %v3105_v42  ;;  %917 = vperm.xlu1 %2011, %v2753_v15  }
 0x278   : > { %v875_v61 = vpop.permute.xlu1 %874  ;;  %v1084_v55 = vsub.f32 %v2605_v14, %v1073_v49  ;;  %981 = vperm.xlu0 %2012, %v2755_v48   ;;  %2052 = vpow2.f32 %v888_v27 }
 0x279   : > { %v883_v46 = vsub.f32 %v2602_v5, %v875_v61  ;;  %2054 = vpow2.f32 %v1022_v2 }
 0x27a   : > { %v2762_v31 = vpop.eup %2048  ;;  %v1088_v25 = vmul.f32 1.442695, %v1084_v55 }
 0x27b   : > { %v890_v47 = vmul.f32 1.442695, %v883_v46  ;;  %v1075_v57 = vpop.permute.xlu0 %1074  ;;  %2013 = vset.pattern.permute.xlu1 %v3105_v42 }
 0x27c   : > { %v941_v39 = vpop.permute.xlu1 %940  ;;  %985 = vperm.xlu1 %2013, %v2762_v31   ;;  %2014 = vset.pattern.permute.xlu0 %v3104_v43  ;;  %v1085_v14 = vsub.f32 %v2615_v62, %v1075_v57 }
 0x27d   : > { %v950_v41 = vsub.f32 %v2612_v12, %v941_v39  ;;  %2056 = vpow2.f32 %v890_v47 }
 0x27e   : > { %2058 = vpow2.f32 %v1088_v25  ;;  %v2769_v18 = vpop.eup %2050  ;;  %v1090_v50 = vmul.f32 1.442695, %v1085_v14 }
 0x27f   : > { %v956_v5 = vmul.f32 1.442695, %v950_v41  ;;  %v1141_v20 = vpop.permute.xlu0 %1140 }
 0x280   : > { %v943_v53 = vpop.permute.xlu1 %942  ;;  %2015 = vset.pattern.permute.xlu1 %v3106_v37  ;;  %v1152_v54 = vsub.f32 %v2625_v1, %v1141_v20 }
 0x281   : > { %v951_v23 = vsub.f32 %v2622_v24, %v943_v53  ;;  %2060 = vpow2.f32 %v956_v5  ;;  %1049 = vperm.xlu1 %2015, %v2769_v18   ;;  %v3109_v5 = vmov 6  }
 0x282   : > { %v2774_v21 = vpop.eup %2052  ;;  %v1156_v19 = vmul.f32 1.442695, %v1152_v54 }
 0x283   : > { %v958_v12 = vmul.f32 1.442695, %v951_v23  ;;  %v1143_v43 = vpop.permute.xlu0 %1142  ;;  %v2776_v16 = vpop.eup %2054  ;;  %921 = vperm.xlu0 %2014, %v2774_v21  }
 0x284   : > { %v1009_v59 = vpop.permute.xlu1 %1008  ;;  %v1153_v1 = vsub.f32 %v2635_v52, %v1143_v43 }
 0x285   : > { %v1018_v62 = vsub.f32 %v2632_v34, %v1009_v59  ;;  %2062 = vpow2.f32 %v958_v12  ;;  %1053 = vperm.xlu1 %2015, %v2776_v16   ;;  %v3110_v59 = vld [vmem:[#allocation34_spill] sm:$0xff] }
 0x286   : > { %2064 = vpow2.f32 %v1090_v50 }
 0x287   : > { %v1024_v24 = vmul.f32 1.442695, %v1018_v62  ;;  %v2781_v32 = vpop.eup %2056  ;;  %v1209_v26 = vpop.permute.xlu0 %1208 }
 0x288   : > { %v1011_v60 = vpop.permute.xlu1 %1010  ;;  %925 = vperm.xlu0 %2014, %v2781_v32   ;;  %v2786_v40 = vpop.eup %2058  ;;  %v1220_v34 = vsub.f32 %v2645_v10, %v1209_v26  ;;  %v1158_v10 = vmul.f32 1.442695, %v1153_v1  ;;  %v3111_v26 = vld [vmem:[#allocation36_spill] sm:$0xff] }
 0x289   : > { %v1019_v35 = vsub.f32 %v2642_v3, %v1011_v60  ;;  %2066 = vpow2.f32 %v1024_v24  ;;  %2017 = vset.pattern.permute.xlu1 %v3107_v36 }
 0x28a   : > { %1117 = vperm.xlu1 %2017, %v2786_v40   ;;  %v1224_v3 = vmul.f32 1.442695, %v1220_v34  ;;  %v3113_v34 = vld [vmem:[#allocation35_spill] sm:$0xff] }
 0x28b   : > { %v1026_v44 = vmul.f32 1.442695, %v1019_v35  ;;  %v2791_v63 = vpop.eup %2060  ;;  %v1211_v28 = vpop.permute.xlu0 %1210  ;;  %v3112_v35 = vmov 7  }
 0x28c   : > { %v1077_v33 = vpop.permute.xlu1 %1076  ;;  %2016 = vset.pattern.permute.xlu0 %v3105_v42 }
 0x28d   : > { %2068 = vpow2.f32 %v1026_v44  ;;  %989 = vperm.xlu0 %2016, %v2791_v63   ;;  %v1086_v22 = vsub.f32 %v2652_v9, %v1077_v33  ;;  %v308_v33 = vld [vmem:[%s3010_s2] sm:$0xff] }
 0x28e   : > { %2018 = vset.pattern.permute.xlu1 %v3105_v42  ;;  %2070 = vpow2.f32 %v1156_v19 }
 0x28f   : > { %v2797_v45 = vpop.eup %2062  ;;  %v1277_v56 = vpop.permute.xlu0 %1276  ;;  %2072 = vpow2.f32 %v1224_v3  ;;  %v1092_v49 = vmul.f32 1.442695, %v1086_v22  ;;  %v309_v3 = vld [vmem:[%s3010_s2 + $0x8] sm:$0xff]  ;;  %v3114_v22 = vld [vmem:[#allocation37_spill] sm:$0xff] }
 0x290   : > { %v1079_v38 = vpop.permute.xlu1 %1078  ;;  %993 = vperm.xlu1 %2018, %v2797_v45   ;;  %v2801_v52 = vpop.eup %2064  ;;  %2074 = vpow2.f32 %v1158_v10  ;;  %v1288_v53 = vsub.f32 %v2665_v4, %v1277_v56 }
 0x291   : > { %2019 = vset.pattern.permute.xlu0 %v3107_v36  ;;  %v1087_v42 = vsub.f32 %v2662_v8, %v1079_v38  ;;  %2076 = vpow2.f32 %v1092_v49  ;;  %v3108_v8 = vmov 5   ;;  %v1934_v38 = vpack.c.bf16 %v309_v3, %v308_v33 }
 0x292   : > { %1121 = vperm.xlu0 %2019, %v2801_v52   ;;  %v1292_v12 = vmul.f32 1.442695, %v1288_v53 }
 0x293   : > { %v2805_v13 = vpop.eup %2066  ;;  %v1279_v2 = vpop.permute.xlu0 %1278  ;;  %v1094_v25 = vmul.f32 1.442695, %v1087_v42  ;;  %1935 = vmatprep.subr.bf16.mxu0 %v1934_v38 }
 0x294   : > { %v1145_v27 = vpop.permute.xlu1 %1144  ;;  %2020 = vset.pattern.permute.xlu1 %v3106_v37  ;;  %v1289_v9 = vsub.f32 %v2675_v0, %v1279_v2  ;;  %1937 = vmatpush3.bf16.msra.mxu0 %v1934_v38 }
 0x295   : > { %v1154_v61 = vsub.f32 %v2672_v6, %v1145_v27  ;;  %1057 = vperm.xlu1 %2020, %v2805_v13   ;;  %v1221_v6 = vsub.f32 %v2655_v7, %v1211_v28  ;;  %v3115_v27 = vmov 0  }
 0x296   : > { %2022 = vset.pattern.permute.xlu0 %v3106_v37  ;;  %v1294_v39 = vmul.f32 1.442695, %v1289_v9 }
 0x297   : > { %v1160_v55 = vmul.f32 1.442695, %v1154_v61  ;;  %v2813_v46 = vpop.eup %2068  ;;  %v1226_v20 = vmul.f32 1.442695, %v1221_v6  ;;  %v1215_v54 = vpop.permute.xlu0 %1214 }
 0x298   : > { %v1147_v47 = vpop.permute.xlu1 %1146  ;;  %1061 = vperm.xlu0 %2022, %v2813_v46   ;;  %v2816_v57 = vpop.eup %2070  ;;  %v1223_v44 = vsub.f32 %v3113_v34, %v1215_v54 }
 0x299   : > { %2078 = vpow2.f32 %v1160_v55  ;;  %2021 = vset.pattern.permute.xlu1 %v3108_v8  ;;  %v2821_v41 = vpop.eup %2072  ;;  %v1155_v62 = vsub.f32 %v3110_v59, %v1147_v47  ;;  %v3121_v59 = vld [vmem:[#allocation2_spill] sm:$0xff] }
 0x29a   : > { %1185 = vperm.xlu1 %2021, %v2816_v57   ;;  %2080 = vpow2.f32 %v1094_v25  ;;  %v2824_v14 = vpop.eup %2074  ;;  %v1230_v56 = vmul.f32 1.442695, %v1223_v44  ;;  %v3124_v44 = vld [vmem:[#allocation9_spill] sm:$0xff] }
 0x29b   : > { %2082 = vpow2.f32 %v1294_v39  ;;  %v2831_v37 = vpop.eup %2076  ;;  %v1283_v28 = vpop.permute.xlu0 %1282 }
 0x29c   : > { %v1213_v0 = vpop.permute.xlu1 %1212  ;;  %2024 = vset.pattern.permute.xlu0 %v3109_v5  ;;  %2084 = vpow2.f32 %v1226_v20  ;;  %v1291_v2 = vsub.f32 %v3114_v22, %v1283_v28  ;;  %v3125_v28 = vld [vmem:[#allocation12_spill] sm:$0xff] }
 0x29d   : > { %1253 = vperm.xlu0 %2024, %v2821_v41   ;;  %v1222_v60 = vsub.f32 %v3111_v26, %v1213_v0  ;;  %v3127_v22 = vld [vmem:[#allocation16_spill] sm:$0xff] }
 0x29e   : > { %1189 = vperm.xlu1 %2021, %v2824_v14   ;;  %v1298_v42 = vmul.f32 1.442695, %v1291_v2 }
 0x29f   : > { %v1228_v19 = vmul.f32 1.442695, %v1222_v60  ;;  %v3123_v60 = vld [vmem:[#allocation7_spill] sm:$0xff] }
 0x2a0   : > { %v1281_v7 = vpop.permute.xlu1 %1280 }
 0x2a1   : > { %v1290_v23 = vsub.f32 %v2702_v17, %v1281_v7  ;;  %2026 = vset.pattern.permute.xlu0 %v3108_v8  ;;  %v1162_v17 = vmul.f32 1.442695, %v1155_v62  ;;  %v3118_v7 = vld [vmem:[#allocation32_spill] sm:$0xff] }
 0x2a2   : > { %2023 = vset.pattern.permute.xlu1 %v3107_v36 }
 0x2a3   : > { %v1296_v50 = vmul.f32 1.442695, %v1290_v23  ;;  %v2834_v43 = vpop.eup %2078  ;;  %1125 = vperm.xlu1 %2023, %v2831_v37  }
 0x2a4   : > { %1193 = vperm.xlu0 %2026, %v2834_v43   ;;  %v2081_v4 = vpop.eup %2080 }
 0x2a5   : > { %2086 = vpow2.f32 %v1296_v50  ;;  %v2839_v24 = vpop.eup %2082  ;;  %v3120_v50 = vld [vmem:[#allocation30_spill] sm:$0xff] }
 0x2a6   : > { %2088 = vpow2.f32 %v1292_v12  ;;  %v2085_v36 = vpop.eup %2084 }
 0x2a7   : > { %1129 = vperm.xlu1 %2023, %v2081_v4   ;;  %2090 = vpow2.f32 %v1162_v17 }
 0x2a8   : > { %2029 = vset.pattern.permute.xlu0 %v3112_v35  ;;  %2092 = vpow2.f32 %v1228_v19 }
 0x2a9   : > { %1325 = vperm.xlu0 %2029, %v2839_v24   ;;  %2094 = vpow2.f32 %v1230_v56 }
 0x2aa   : > { %2096 = vpow2.f32 %v1298_v42 }
 0x2ab   : > { %2025 = vset.pattern.permute.xlu1 %v3109_v5 }
 0x2ac   : > { %1257 = vperm.xlu1 %2025, %v2085_v36  }
 0x2af   : > { %v2087_v1 = vpop.eup %2086 }
 0x2b0   : > { %1329 = vperm.xlu0 %2029, %v2087_v1   ;;  %v2089_v10 = vpop.eup %2088  ;;  %2027 = vset.pattern.permute.xlu1 %v3112_v35 }
 0x2b1   : > { %1321 = vperm.xlu1 %2027, %v2089_v10   ;;  %v2091_v49 = vpop.eup %2090 }
 0x2b2   : > { %v2093_v61 = vpop.eup %2092 }
 0x2b4   : > { %896 = vrot.lane.b32.xlu0 %v2748_v30, %s2140_s10  ;;  %v2095_v30 = vpop.eup %2094 }
 0x2b5   : > { %2032 = vset.pattern.permute.xlu0 %v3115_v27  ;;  %2028 = vset.pattern.permute.xlu1 %v3108_v8  ;;  %v2097_v9 = vpop.eup %2096 }
 0x2b6   : > { %1197 = vperm.xlu1 %2028, %v2091_v49  }
 0x2b8   : > { %964 = vrot.lane.b32.xlu0 %v2755_v48, %s2141_s11 }
 0x2ba   : > { %2030 = vset.pattern.permute.xlu1 %v3109_v5 }
 0x2bb   : > { %1261 = vperm.xlu1 %2030, %v2093_v61  }
 0x2bc   : > { %900 = vrot.lane.b32.xlu0 %v2774_v21, %s2140_s10 }
 0x2bf   : > { %1265 = vperm.xlu1 %2030, %v2095_v30  }
 0x2c0   : > { %902 = vrot.lane.b32.xlu0 %v2781_v32, %s2140_s10 }
 0x2c3   : > { %2031 = vset.pattern.permute.xlu1 %v3112_v35 }
 0x2c4   : > { %968 = vrot.lane.b32.xlu0 %v2791_v63, %s2141_s11  ;;  %1333 = vperm.xlu1 %2031, %v2097_v9  }
 0x2c8   : > { %970 = vrot.lane.b32.xlu0 %v2797_v45, %s2141_s11  ;;  %898 = vrot.lane.b32.xlu1 %v2753_v15, %s2140_s10  ;;  %v839_v15 = vpop.permute.xlu1 %838 }
 0x2c9   : > { %2033 = vset.pattern.permute.xlu1 %v3115_v27  ;;  %v856_v23 = vmul.f32 %v3118_v7, %v839_v15  ;;  %v3129_v15 = vld [vmem:[#allocation8_spill] sm:$0xff] }
 0x2cc   : > { %1036 = vrot.lane.b32.xlu0 %v2805_v13, %s2142_s12  ;;  %966 = vrot.lane.b32.xlu1 %v2762_v31, %s2141_s11  ;;  %v844_v48 = vpop.permute.xlu1 %843 }
 0x2d0   : > { %1038 = vrot.lane.b32.xlu0 %v2813_v46, %s2142_s12  ;;  %1032 = vrot.lane.b32.xlu1 %v2769_v18, %s2142_s12  ;;  %v849_v31 = vpop.permute.xlu1 %848 }
 0x2d4   : > { %1104 = vrot.lane.b32.xlu0 %v2831_v37, %s2143_s13  ;;  %1034 = vrot.lane.b32.xlu1 %v2776_v16, %s2142_s12  ;;  %v2903_v18 = vpop.permute.xlu1 %853  ;;  %v3119_v37 = vld [vmem:[#allocation4_spill] sm:$0xff] }
 0x2d8   : > { %1106 = vrot.lane.b32.xlu0 %v2081_v4, %s2143_s13  ;;  %1100 = vrot.lane.b32.xlu1 %v2786_v40, %s2143_s13 }
 0x2dc   : > { %1172 = vrot.lane.b32.xlu0 %v2834_v43, %s2144_s14  ;;  %1102 = vrot.lane.b32.xlu1 %v2801_v52, %s2143_s13  ;;  %v857_v43 = vmul.f32 %v3120_v50, %v844_v48 }
 0x2e0   : > { %1174 = vrot.lane.b32.xlu0 %v2091_v49, %s2144_s14  ;;  %1168 = vrot.lane.b32.xlu1 %v2816_v57, %s2144_s14 }
 0x2e4   : > { %1240 = vrot.lane.b32.xlu0 %v2093_v61, %s2145_s15  ;;  %1170 = vrot.lane.b32.xlu1 %v2824_v14, %s2144_s14  ;;  %v3117_v14 = vld [vmem:[#allocation6_spill] sm:$0xff] }
 0x2e8   : > { %1308 = vrot.lane.b32.xlu0 %v2087_v1, %s2146_s16  ;;  %1236 = vrot.lane.b32.xlu1 %v2821_v41, %s2145_s15  ;;  %v3116_v41 = vld [vmem:[#allocation3_spill] sm:$0xff] }
 0x2ec   : > { %1238 = vrot.lane.b32.xlu1 %v2085_v36, %s2145_s15 }
 0x2f0   : > { %1304 = vrot.lane.b32.xlu1 %v2089_v10, %s2146_s16  ;;  %v3126_v10 = vld [vmem:[#allocation14_spill] sm:$0xff] }
 0x2f2   : > { %v914_v16 = vpop.permute.xlu0 %913 }
 0x2f3   : > { %v928_v5 = vmul.f32 %v3116_v41, %v914_v16  ;;  %v3130_v16 = vld [vmem:[#allocation18_spill] sm:$0xff] }
 0x2f4   : > { %1306 = vrot.lane.b32.xlu1 %v2839_v24, %s2146_s16  ;;  %v3122_v24 = vld [vmem:[#allocation5_spill] sm:$0xff] }
 0x2f5   : > { %v932_v17 = vadd.f32 %v928_v5, %v856_v23  ;;  %v3134_v23 = vld [vmem:[#allocation21_spill] sm:$0xff] }
 0x2f6   : > { %v918_v21 = vpop.permute.xlu1 %917 }
 0x2f7   : > { %v982_v40 = vpop.permute.xlu0 %981  ;;  %v929_v20 = vmul.f32 %v3117_v14, %v918_v21  ;;  %v3133_v14 = vld [vmem:[#allocation15_spill] sm:$0xff] }
 0x2f8   : > { %1242 = vrot.lane.b32.xlu1 %v2095_v30, %s2145_s15  ;;  %v996_v12 = vmul.f32 %v3119_v37, %v982_v40  ;;  %v3128_v30 = vld [vmem:[#allocation19_spill] sm:$0xff] }
 0x2f9   : > { %v933_v26 = vadd.f32 %v929_v20, %v857_v43 }
 0x2fa   : > { %v1000_v34 = vadd.f32 %v996_v12, %v932_v17  ;;  %v3135_v12 = vld [vmem:[#allocation24_spill] sm:$0xff] }
 0x2fb   : > { %v986_v32 = vpop.permute.xlu1 %985 }
 0x2fc   : > { %1310 = vrot.lane.b32.xlu1 %v2097_v9, %s2146_s16  ;;  %v997_v62 = vmul.f32 %v3121_v59, %v986_v32  ;;  %v3136_v59 = vld [vmem:[#allocation20_spill] sm:$0xff] }
 0x2fe   : > { %v1001_v1 = vadd.f32 %v997_v62, %v933_v26 }
 0x300   : > { %v1050_v63 = vpop.permute.xlu1 %1049 }
 0x301   : > { %v1064_v54 = vmul.f32 %v3122_v24, %v1050_v63 }
 0x302   : > { %v922_v45 = vpop.permute.xlu0 %921 }
 0x303   : > { %v1068_v3 = vadd.f32 %v1064_v54, %v1000_v34  ;;  %v930_v48 = vmul.f32 %v3129_v15, %v922_v45  ;;  %v3139_v34 = vld [vmem:[#allocation33_spill] sm:$0xff] }
 0x304   : > { %v1054_v52 = vpop.permute.xlu1 %1053 }
 0x305   : > { %v1065_v35 = vmul.f32 %v3123_v60, %v1054_v52  ;;  %v3131_v52 = vld [vmem:[#allocation26_spill] sm:$0xff]  ;;  %v3138_v60 = vld [vmem:[#allocation23_spill] sm:$0xff] }
 0x307   : > { %v926_v55 = vpop.permute.xlu0 %925  ;;  %v1069_v38 = vadd.f32 %v1065_v35, %v1001_v1 }
 0x309   : > { %v1118_v13 = vpop.permute.xlu1 %1117 }
 0x30a   : > { %v1132_v19 = vmul.f32 %v3124_v44, %v1118_v13  ;;  %v858_v13 = vmul.f32 %v3131_v52, %v849_v31  ;;  %v859_v44 = vmul.f32 %v3139_v34, %v2903_v18 }
 0x30c   : > { %v990_v47 = vpop.permute.xlu0 %989  ;;  %v1136_v49 = vadd.f32 %v1132_v19, %v1068_v3  ;;  %v3140_v19 = vld [vmem:[#allocation13_spill] sm:$0xff] }
 0x30f   : > { %v994_v46 = vpop.permute.xlu1 %993 }
 0x310   : > { %v999_v1 = vmul.f32 %v3140_v19, %v994_v46 }
 0x311   : > { %v1122_v57 = vpop.permute.xlu0 %1121 }
 0x312   : > { %v1133_v33 = vmul.f32 %v3125_v28, %v1122_v57  ;;  %v3132_v57 = vld [vmem:[#allocation11_spill] sm:$0xff]  ;;  %v3141_v28 = vld [vmem:[#allocation17_spill] sm:$0xff] }
 0x314   : > { %v1058_v25 = vpop.permute.xlu1 %1057  ;;  %v1137_v61 = vadd.f32 %v1133_v33, %v1069_v38  ;;  %v3142_v38 = vld [vmem:[#allocation28_spill] sm:$0xff] }
 0x315   : > { %v1066_v20 = vmul.f32 %v3133_v14, %v1058_v25 }
 0x317   : > { %v1062_v8 = vpop.permute.xlu0 %1061 }
 0x318   : > { %v1067_v33 = vmul.f32 %v3141_v28, %v1062_v8 }
 0x319   : > { %v1186_v6 = vpop.permute.xlu1 %1185 }
 0x31a   : > { %v1200_v56 = vmul.f32 %v3126_v10, %v1186_v6  ;;  %v998_v6 = vmul.f32 %v3132_v57, %v990_v47  ;;  %v3137_v47 = vld [vmem:[#allocation10_spill] sm:$0xff] }
 0x31b   : > { %v931_v54 = vmul.f32 %v3137_v47, %v926_v55 }
 0x31c   : > { %v1254_v0 = vpop.permute.xlu0 %1253  ;;  %v1204_v21 = vadd.f32 %v1200_v56, %v1136_v49  ;;  %v3144_v49 = vld [vmem:[#allocation31_spill] sm:$0xff] }
 0x31d   : > { %v1190_v39 = vpop.permute.xlu1 %1189  ;;  %v1268_v32 = vmul.f32 %v3130_v16, %v1254_v0 }
 0x31e   : > { %v1201_v2 = vmul.f32 %v3127_v22, %v1190_v39  ;;  %v934_v39 = vadd.f32 %v930_v48, %v858_v13  ;;  %v3147_v13 = vld [vmem:[#allocation29_spill] sm:$0xff] }
 0x31f   : > { %v1272_v7 = vadd.f32 %v1268_v32, %v1204_v21  ;;  %v3146_v21 = vld [vmem:[#allocation25_spill] sm:$0xff] }
 0x320   : > { %v1205_v40 = vadd.f32 %v1201_v2, %v1137_v61  ;;  %v1002_v43 = vadd.f32 %v998_v6, %v934_v39  ;;  %v3143_v2 = vld [vmem:[#allocation22_spill] sm:$0xff] }
 0x322   : > { %v1126_v53 = vpop.permute.xlu1 %1125  ;;  %v1070_v24 = vadd.f32 %v1066_v20, %v1002_v43 }
 0x323   : > { %v1194_v4 = vpop.permute.xlu0 %1193  ;;  %v1134_v0 = vmul.f32 %v3136_v59, %v1126_v53  ;;  %v935_v53 = vadd.f32 %v931_v54, %v859_v44 }
 0x324   : > { %v1202_v35 = vmul.f32 %v3138_v60, %v1194_v4 }
 0x325   : > { %v1138_v26 = vadd.f32 %v1134_v0, %v1070_v24  ;;  %v1003_v55 = vadd.f32 %v999_v1, %v935_v53 }
 0x326   : > { %v1130_v36 = vpop.permute.xlu1 %1129 }
 0x327   : > { %v1206_v56 = vadd.f32 %v1202_v35, %v1138_v26  ;;  %v1071_v4 = vadd.f32 %v1067_v33, %v1003_v55 }
 0x328   : > { %v1326_v27 = vpop.permute.xlu0 %1325 }
 0x329   : > { %v1337_v50 = vmul.f32 %v3135_v12, %v1326_v27  ;;  %v1135_v27 = vmul.f32 %v3143_v2, %v1130_v36 }
 0x32b   : > { %v1258_v42 = vpop.permute.xlu1 %1257  ;;  %v1139_v48 = vadd.f32 %v1135_v27, %v1071_v4 }
 0x32c   : > { %v1269_v9 = vmul.f32 %v3128_v30, %v1258_v42  ;;  %v3145_v30 = vld [vmem:[#allocation27_spill] sm:$0xff] }
 0x32e   : > { %v1273_v41 = vadd.f32 %v1269_v9, %v1205_v40 }
 0x32f   : > { %v1330_v63 = vpop.permute.xlu0 %1329 }
 0x330   : > { %v1322_v5 = vpop.permute.xlu1 %1321  ;;  %v1341_v17 = vadd.f32 %v1337_v50, %v1273_v41  ;;  %v1338_v42 = vmul.f32 %v3144_v49, %v1330_v63 }
 0x331   : > { %v1336_v37 = vmul.f32 %v3134_v23, %v1322_v5 }
 0x333   : > { %v897_v45 = vpop.permute.xlu0 %896  ;;  %v1340_v62 = vadd.f32 %v1336_v37, %v1272_v7 }
 0x335   : > { %1900 = vmatprep.mubr.msk.f32.mxu0 %vm347_vm4, %v1340_v62  ;;  %v1198_v31 = vpop.permute.xlu1 %1197  ;;  %v908_v62 = vadd.f32 %v2730_v11, %v897_v45 }
 0x336   : > { %1901 = vmatmul.mubr.msk.f32.vlgmr.msra.gmra.mrb[0].mxu0 %vm347_vm4, %v1341_v17  ;;  %v1203_v9 = vmul.f32 %v3145_v30, %v1198_v31 }
 0x337   : > { %v965_v25 = vpop.permute.xlu0 %964 }
 0x338   : > { %v1207_v16 = vadd.f32 %v1203_v9, %v1139_v48  ;;  %v976_v24 = vadd.f32 %v965_v25, %v908_v62 }
 0x33a   : > { %v1262_v3 = vpop.permute.xlu1 %1261 }
 0x33b   : > { %v901_v10 = vpop.permute.xlu0 %900  ;;  %v1270_v22 = vmul.f32 %v3142_v38, %v1262_v3 }
 0x33c   : > { %v910_v17 = vadd.f32 %v2736_v51, %v901_v10 }
 0x33d   : > { %v1274_v61 = vadd.f32 %v1270_v22, %v1206_v56 }
 0x33e   : > { %v1266_v18 = vpop.permute.xlu1 %1265 }
 0x33f   : > { %v903_v15 = vpop.permute.xlu0 %902  ;;  %v1342_v46 = vadd.f32 %v1338_v42, %v1274_v61  ;;  %v1271_v8 = vmul.f32 %v3146_v21, %v1266_v18 }
 0x340   : > { %v911_v25 = vadd.f32 %v2739_v58, %v903_v15 }
 0x341   : > { %1903 = vmatprep.mubr.msk.f32.mxu0 %vm347_vm4, %v1342_v46  ;;  %v1275_v52 = vadd.f32 %v1271_v8, %v1207_v16 }
 0x343   : > { %v969_v32 = vpop.permute.xlu0 %968  ;;  %v1334_v40 = vpop.permute.xlu1 %1333 }
 0x344   : > { %v1339_v36 = vmul.f32 %v3147_v13, %v1334_v40  ;;  %v978_v31 = vadd.f32 %v969_v32, %v910_v17  ;;  %v1489_v40 = vld [vmem:[%s3013_s5] sm:$0xff]  ;;  %v1482_v17 = vld [vmem:[%s296_s26 + $0x8] sm:$0xff] }
 0x345   : > { %v1485_v13 = vld [vmem:[%s3012_s4] sm:$0xff] }
 0x346   : > { %v1343_v57 = vadd.f32 %v1339_v36, %v1275_v52  ;;  %v1490_v52 = vld [vmem:[%s3013_s5 + $0x8] sm:$0xff] }
 0x347   : > { %v971_v63 = vpop.permute.xlu0 %970  ;;  %v899_v6 = vpop.permute.xlu1 %898 }
 0x348   : > { %1904 = vmatmul.mubr.msk.f32.gmra.mrb[2].mxu0 %vm347_vm4, %v1343_v57  ;;  %v909_v26 = vadd.f32 %v2733_v29, %v899_v6  ;;  %v979_v29 = vadd.f32 %v971_v63, %v911_v25  ;;  %v1938_v57 = vpack.c.bf16 %v1490_v52, %v1489_v40  ;;  %v1486_v63 = vld [vmem:[%s3012_s4 + $0x8] sm:$0xff]  ;;  %vm1493_vm4 = vcmask 261120   ;;  %v1867_v25 = vld [vmem:[%s3014_s6] ss:$0 sm:$0xff] }
 0x349   : > { %v1946_v6 = vpack.c.bf16 %v1486_v63, %v1485_v13 }
 0x34a   : > { %1939 = vmatprep.subr.bf16.mxu0 %v1938_v57 }
 0x34b   : > { %v1037_v41 = vpop.permute.xlu0 %1036  ;;  %v967_v5 = vpop.permute.xlu1 %966  ;;  %1947 = vmatprep.subr.bf16.mxu1 %v1946_v6  ;;  %1941 = vmatpush3.bf16.msra.mxu0 %v1938_v57 }
 0x34c   : > { %v1046_v60 = vadd.f32 %v1037_v41, %v978_v31  ;;  %v977_v34 = vadd.f32 %v967_v5, %v909_v26  ;;  %1949 = vmatpush3.bf16.msra.mxu1 %v1946_v6  ;;  %v2984_v31 = vld [vmem:[%s296_s26 + $0x18] sm:$0xff] }
 0x34f   : > { %v1039_v39 = vpop.permute.xlu0 %1038  ;;  %v1033_v14 = vpop.permute.xlu1 %1032 }
 0x350   : > { %v1044_v35 = vadd.f32 %v1033_v14, %v976_v24  ;;  %v1047_v27 = vadd.f32 %v1039_v39, %v979_v29  ;;  %v1491_v39 = vld [vmem:[%s3013_s5 + $0x10] sm:$0xff]  ;;  %v1492_v14 = vld [vmem:[%s3013_s5 + $0x18] sm:$0xff] }
 0x351   : > { %v2980_v24 = vld [vmem:[%s296_s26 + $0x10] sm:$0xff] }
 0x353   : > { %v1105_v20 = vpop.permute.xlu0 %1104  ;;  %v1035_v7 = vpop.permute.xlu1 %1034 }
 0x354   : > { %v1114_v44 = vadd.f32 %v1105_v20, %v1046_v60  ;;  %v1045_v53 = vadd.f32 %v1035_v7, %v977_v34  ;;  %v1487_v20 = vld [vmem:[%s3012_s4 + $0x10] sm:$0xff] }
 0x357   : > { %v1107_v23 = vpop.permute.xlu0 %1106  ;;  %v1101_v37 = vpop.permute.xlu1 %1100 }
 0x358   : > { %v1112_v19 = vadd.f32 %v1101_v37, %v1044_v35  ;;  %v1115_v42 = vadd.f32 %v1107_v23, %v1047_v27  ;;  %v1942_v23 = vpack.c.bf16 %v1492_v14, %v1491_v39  ;;  %v1488_v37 = vld [vmem:[%s3012_s4 + $0x18] sm:$0xff] }
 0x35a   : > { %1943 = vmatprep.subr.bf16.mxu0 %v1942_v23 }
 0x35b   : > { %v1173_v12 = vpop.permute.xlu0 %1172  ;;  %v1103_v50 = vpop.permute.xlu1 %1102  ;;  %1945 = vmatpush3.bf16.msra.mxu0 %v1942_v23 }
 0x35c   : > { %v1182_v28 = vadd.f32 %v1173_v12, %v1114_v44  ;;  %v1113_v56 = vadd.f32 %v1103_v50, %v1045_v53 }
 0x35f   : > { %v1169_v43 = vpop.permute.xlu1 %1168  ;;  %v1175_v59 = vpop.permute.xlu0 %1174 }
 0x360   : > { %v1180_v33 = vadd.f32 %v1169_v43, %v1112_v19  ;;  %v1183_v4 = vadd.f32 %v1175_v59, %v1115_v42  ;;  %v1950_v43 = vpack.c.bf16 %v1488_v37, %v1487_v20 }
 0x362   : > { %1951 = vmatprep.subr.bf16.mxu1 %v1950_v43 }
 0x363   : > { %v1171_v0 = vpop.permute.xlu1 %1170  ;;  %v1241_v47 = vpop.permute.xlu0 %1240  ;;  %1953 = vmatpush3.bf16.msra.mxu1 %v1950_v43 }
 0x364   : > { %v1250_v11 = vadd.f32 %v1241_v47, %v1182_v28  ;;  %v1181_v10 = vadd.f32 %v1171_v0, %v1113_v56  ;;  %v1481_v0 = vld [vmem:[%s296_s26] sm:$0xff] }
 0x365   : > { %1928 = vmatprep.mubr.msk.f32.mxu1 %vm1493_vm4, %v1481_v0 }
 0x366   : > { %1929 = vmatmul.mubr.msk.f32.vlgmr.msra.gmra.mrb[0].mxu1 %vm1493_vm4, %v1482_v17 }
 0x367   : > { %v1237_v54 = vpop.permute.xlu1 %1236  ;;  %v1309_v3 = vpop.permute.xlu0 %1308  ;;  %1931 = vmatprep.mubr.msk.f32.mxu1 %vm1493_vm4, %v2980_v24 }
 0x368   : > { %v1248_v45 = vadd.f32 %v1237_v54, %v1180_v33  ;;  %v1318_v38 = vadd.f32 %v1309_v3, %v1250_v11 }
 0x36a   : > { %1932 = vmatmul.mubr.msk.f32.gmra.mrb[2].mxu1 %vm1493_vm4, %v2984_v31 }
 0x36b   : > { %v1239_v1 = vpop.permute.xlu1 %1238 }
 0x36c   : > { %v1249_v55 = vadd.f32 %v1239_v1, %v1181_v10 }
 0x36f   : > { %v1305_v51 = vpop.permute.xlu1 %1304 }
 0x370   : > { %v1316_v22 = vadd.f32 %v1305_v51, %v1248_v45 }
 0x372   : > { %2098 = vrcp.f32 %v1316_v22 }
 0x373   : > { %v1307_v2 = vpop.permute.xlu1 %1306  ;;  %2100 = vrcp.f32 %v1318_v38 }
 0x374   : > { %v1317_v49 = vadd.f32 %v1307_v2, %v1249_v55 }
 0x376   : > { %2102 = vrcp.f32 %v1317_v49 }
 0x377   : > { %v1243_v61 = vpop.permute.xlu1 %1242 }
 0x378   : > { %v1251_v30 = vadd.f32 %v1243_v61, %v1183_v4 }
 0x37b   : > { %v1311_v9 = vpop.permute.xlu1 %1310 }
 0x37c   : > { %v2099_v18 = vpop.eup %2098  ;;  %v1319_v46 = vadd.f32 %v1311_v9, %v1251_v30 }
 0x37d   : > { %v1348_v48 = vmul.f32 %v2099_v18, %v1316_v22  ;;  %v2101_v58 = vpop.eup %2100 }
 0x37e   : > { %2104 = vrcp.f32 %v1319_v46  ;;  %v1350_v8 = vmul.f32 %v2101_v58, %v1318_v38 }
 0x37f   : > { %v1352_v15 = vsub.f32 2.0, %v1348_v48 }
 0x380   : > { %v2103_v21 = vpop.eup %2102  ;;  %v1354_v41 = vsub.f32 2.0, %v1350_v8 }
 0x381   : > { %v1356_v16 = vmul.f32 %v2099_v18, %v1352_v15  ;;  %v1349_v32 = vmul.f32 %v2103_v21, %v1317_v49 }
 0x382   : > { %v1358_v12 = vmul.f32 %v2101_v58, %v1354_v41 }
 0x383   : > { %v1353_v36 = vsub.f32 2.0, %v1349_v32  ;;  %1459 = vperm.xlu0 %2032, %v1356_v16  }
 0x385   : > { %v1357_v5 = vmul.f32 %v2103_v21, %v1353_v36 }
 0x387   : > { %1464 = vperm.xlu1 %2033, %v1357_v5  }
 0x388   : > { %v2105_v7 = vpop.eup %2104 }
 0x389   : > { %v1351_v50 = vmul.f32 %v2105_v7, %v1319_v46 }
 0x38b   : > { %v1355_v59 = vsub.f32 2.0, %v1351_v50  ;;  %1469 = vperm.xlu1 %2033, %v1358_v12  }
 0x38d   : > { %v1359_v62 = vmul.f32 %v2105_v7, %v1355_v59 }
 0x38f   : > { %1474 = vperm.xlu0 %2032, %v1359_v62  }
 0x402   : > { %v1460_v54 = vpop.permute.xlu0 %1459 }
 0x406   : > { %v1465_v60 = vpop.permute.xlu1 %1464 }
 0x409   : > { %v1902_v47 = vpop.f32.mrb[0].mxu0 }
 0x40a   : > { %v1438_v26 = vpop.f32.mrb[1].mxu0  ;;  %v1478_v34 = vmul.f32 %v1902_v47, %v1465_v60  ;;  %v1470_v19 = vpop.permute.xlu1 %1469 }
 0x40b   : > { %v1477_v35 = vmul.f32 %v1460_v54, %v1438_v26 }
 0x40d   : > { %1914 = vmatprep.mubr.msk.f32.mxu0 %vm1493_vm4, %v1477_v35 }
 0x40e   : > { %1915 = vmatmul.mubr.msk.f32.vlgmr.msra.gmra.mrb[4].mxu0 %vm1493_vm4, %v1478_v34  ;;  %v1475_v53 = vpop.permute.xlu0 %1474 }
 0x41b   : > { %v1905_v44 = vpop.f32.mrb[2].mxu0 }
 0x41c   : > { %v1448_v1 = vpop.f32.mrb[3].mxu0  ;;  %v1480_v33 = vmul.f32 %v1905_v44, %v1475_v53 }
 0x41d   : > { %v1479_v28 = vmul.f32 %v1470_v19, %v1448_v1 }
 0x41f   : > { %1917 = vmatprep.mubr.msk.f32.mxu0 %vm1493_vm4, %v1479_v28 }
 0x420   : > { %1918 = vmatmul.mubr.msk.f32.gmra.mrb[6].mxu0 %vm1493_vm4, %v1480_v33 }
 0x439   : > { %v1930_v3 = vpop.f32.mrb[0].mxu1 }
 0x43a   : > { %v1669_v56 = vpop.f32.mrb[1].mxu1 }
 0x43d   : > { %v1933_v11 = vpop.f32.mrb[2].mxu1 }
 0x43e   : > { %v1679_v45 = vpop.f32.mrb[3].mxu1 }
 0x4e1   : > { %v1916_v51 = vpop.f32.mrb[4].mxu0 }
 0x4e2   : > { %v1675_v10 = vadd.f32 %v1930_v3, %v1916_v51  ;;  %v1572_v38 = vpop.f32.mrb[5].mxu0 }
 0x4e3   : > { %v1670_v22 = vadd.f32 %v1669_v56, %v1572_v38 }
 0x4e4   : > { %v1696_v29 = vadd.f32 %v1867_v25, %v1675_v10 }
 0x4e5   : > { %v1695_v55 = vadd.f32 %v1867_v25, %v1670_v22 }
 0x4e6   : > { %v1869_v2 = vmul.f32 -1.442695, %v1696_v29 }
 0x4e7   : > { %v1868_v27 = vmul.f32 -1.442695, %v1695_v55 }
 0x4e8   : > { %2106 = vpow2.f32 %v1869_v2 }
 0x4e9   : > { %2108 = vpow2.f32 %v1868_v27 }
 0x4f2   : > { %v2107_v49 = vpop.eup %2106 }
 0x4f3   : > { %v2109_v42 = vpop.eup %2108  ;;  %v1712_v61 = vadd.f32 1.0, %v2107_v49  ;;  %v1919_v4 = vpop.f32.mrb[6].mxu0 }
 0x4f4   : > { %v1711_v30 = vadd.f32 1.0, %v2109_v42  ;;  %v1685_v9 = vadd.f32 %v1933_v11, %v1919_v4  ;;  %v1582_v18 = vpop.f32.mrb[7].mxu0 }
 0x4f5   : > { %2110 = vrcp.f32 %v1712_v61  ;;  %v1680_v46 = vadd.f32 %v1679_v45, %v1582_v18 }
 0x4f6   : > { %2112 = vrcp.f32 %v1711_v30  ;;  %v1698_v48 = vadd.f32 %v1867_v25, %v1685_v9 }
 0x4f7   : > { %v1697_v58 = vadd.f32 %v1867_v25, %v1680_v46 }
 0x4f8   : > { %v1871_v15 = vmul.f32 -1.442695, %v1698_v48 }
 0x4f9   : > { %v1870_v21 = vmul.f32 -1.442695, %v1697_v58 }
 0x4fa   : > { %2114 = vpow2.f32 %v1871_v15 }
 0x4fb   : > { %2116 = vpow2.f32 %v1870_v21 }
 0x4ff   : > { %v2111_v8 = vpop.eup %2110 }
 0x500   : > { %v2113_v16 = vpop.eup %2112  ;;  %v1728_v32 = vsub.f32 1.0, %v2111_v8  ;;  %v1724_v63 = vmul.f32 %v2111_v8, %v1482_v17 }
 0x501   : > { %v1727_v40 = vsub.f32 1.0, %v2113_v16  ;;  %v1723_v13 = vmul.f32 %v2113_v16, %v1481_v0 }
 0x502   : > { %v1732_v52 = vmul.f32 %v1728_v32, %v1478_v34 }
 0x503   : > { %v1731_v36 = vmul.f32 %v1727_v40, %v1477_v35 }
 0x504   : > { %v2115_v57 = vpop.eup %2114  ;;  %v1736_v39 = vadd.f32 %v1732_v52, %v1724_v63 }
 0x505   : > { %v2117_v6 = vpop.eup %2116  ;;  %v1735_v41 = vadd.f32 %v1731_v36, %v1723_v13  ;;  %v1714_v5 = vadd.f32 1.0, %v2115_v57 }
 0x506   : > { %v1713_v14 = vadd.f32 1.0, %v2117_v6  ;;  %1740 = vst.msk [vmem:[%s302_s9 + $0x8] sm:$0xff] %vm1493_vm4, %v1736_v39 }
 0x507   : > { %1739 = vst.msk [vmem:[%s302_s9] sm:$0xff] %vm1493_vm4, %v1735_v41  ;;  %2118 = vrcp.f32 %v1714_v5 }
 0x508   : > { %2120 = vrcp.f32 %v1713_v14 }
 0x511   : > { %v2119_v20 = vpop.eup %2118 }
 0x512   : > { %v2121_v7 = vpop.eup %2120  ;;  %v1730_v23 = vsub.f32 1.0, %v2119_v20  ;;  %v1726_v59 = vmul.f32 %v2119_v20, %v2984_v31 }
 0x513   : > { %v1729_v37 = vsub.f32 1.0, %v2121_v7  ;;  %v1725_v50 = vmul.f32 %v2121_v7, %v2980_v24 }
 0x514   : > { %v1734_v12 = vmul.f32 %v1730_v23, %v1480_v33 }
 0x515   : > { %v1733_v43 = vmul.f32 %v1729_v37, %v1479_v28 }
 0x516   : > { %v1738_v62 = vadd.f32 %v1734_v12, %v1726_v59 }
 0x517   : > { %v1737_v0 = vadd.f32 %v1733_v43, %v1725_v50 }
 0x518   : > { %1742 = vst.msk [vmem:[%s302_s9 + $0x18] sm:$0xff] %vm1493_vm4, %v1738_v62 }
 0x519   : > { %1741 = vst.msk [vmem:[%s302_s9 + $0x10] sm:$0xff] %vm1493_vm4, %v1737_v0 }
 0x51a PF: > { %s17_s24 = sadd.s32 1, %s2128_s24  }
 0x51b   : > { %p14_p4 = scmp.ge.s32.totalorder %s17_s24, 4  }
 0x51d   :  { %16 = sbr.rel (!%p14_p4) target bundleno = 1 (0x1), region = 81 }

</bundles_post_ra>
